<compile_context>
chip_gen: v6e
topology: v6e:2x2x1
jax: 0.10.0
libtpu: 0.0.40
codegen_flags: <defaults>
</compile_context>

<pallas_src>
import functools

import jax
import jax.numpy as jnp
from jax.experimental import pallas as pl
from jax.experimental.pallas import tpu as pltpu

LANE = 128                          # pad every node / feature axis to a multiple of this
_VMEM_LIMIT = 48 * 1024 * 1024      # fits v5e/v6e (128 MiB) and v7x (64 MiB) physical VMEM


def _round_up(n, m):
    return ((n + m - 1) // m) * m


def _pick_tile(n):
    for t in (512, 256, 128):
        if n % t == 0:
            return t
    return n


def _pad2(a, rows, cols):
    return jnp.pad(a, ((0, rows - a.shape[0]), (0, cols - a.shape[1])))


# ----------------------------- Pallas kernels ------------------------------

def _dense_kernel(x_ref, w_ref, b_ref, o_ref, *, relu):
    """o = x @ w + b (optional ReLU). bf16 MXU inputs, f32 accumulate + f32 epilogue."""
    h = jnp.dot(x_ref[...].astype(jnp.bfloat16), w_ref[...],
                preferred_element_type=jnp.float32)
    h = h + b_ref[...]
    if relu:
        h = jnp.maximum(h, 0.0)
    o_ref[...] = h


def _aggregate_kernel(a_ref, h_ref, b_ref, o_ref, acc_ref, *, relu):
    """o = A_hat @ h + b (optional ReLU), K-tiled with an f32 VMEM accumulator."""
    k = pl.program_id(1)

    @pl.when(k == 0)
    def _():
        acc_ref[...] = jnp.zeros_like(acc_ref)

    acc_ref[...] += jnp.dot(a_ref[...], h_ref[...].astype(jnp.bfloat16),
                            preferred_element_type=jnp.float32)

    @pl.when(k == pl.num_programs(1) - 1)
    def _():
        out = acc_ref[...] + b_ref[...]
        if relu:
            out = jnp.maximum(out, 0.0)
        o_ref[...] = out


# ----------------------------- pallas_call wrappers ------------------------

def _dense(x, w, b, relu):
    n, fin = x.shape
    fout = w.shape[1]
    tm = _pick_tile(n)
    cost = pl.CostEstimate(
        flops=2 * n * fin * fout,
        transcendentals=0,
        bytes_accessed=n * fin * 4 + fin * fout * 2 + fout * 4 + n * fout * 4)
    return pl.pallas_call(
        functools.partial(_dense_kernel, relu=relu),
        out_shape=jax.ShapeDtypeStruct((n, fout), jnp.float32),
        grid_spec=pltpu.PrefetchScalarGridSpec(
            num_scalar_prefetch=0,
            grid=(n // tm,),
            in_specs=[pl.BlockSpec((tm, fin), lambda i: (i, 0)),
                      pl.BlockSpec((fin, fout), lambda i: (0, 0)),
                      pl.BlockSpec((1, fout), lambda i: (0, 0))],
            out_specs=pl.BlockSpec((tm, fout), lambda i: (i, 0))),
        compiler_params=pltpu.CompilerParams(
            dimension_semantics=("parallel",),
            vmem_limit_bytes=_VMEM_LIMIT),
        cost_estimate=cost,
    )(x, w, b)


def _aggregate(a, h, b, relu):
    n = a.shape[0]
    f = h.shape[1]
    tm = _pick_tile(n)
    tk = _pick_tile(n)
    cost = pl.CostEstimate(
        flops=2 * n * n * f,
        transcendentals=0,
        bytes_accessed=n * n * 2 + n * f * 4 + f * 4 + n * f * 4)
    return pl.pallas_call(
        functools.partial(_aggregate_kernel, relu=relu),
        out_shape=jax.ShapeDtypeStruct((n, f), jnp.float32),
        grid_spec=pltpu.PrefetchScalarGridSpec(
            num_scalar_prefetch=0,
            grid=(n // tm, n // tk),
            in_specs=[pl.BlockSpec((tm, tk), lambda i, k: (i, k)),
                      pl.BlockSpec((tk, f), lambda i, k: (k, 0)),
                      pl.BlockSpec((1, f), lambda i, k: (0, 0))],
            out_specs=pl.BlockSpec((tm, f), lambda i, k: (i, 0)),
            scratch_shapes=[pltpu.VMEM((tm, f), jnp.float32)]),
        compiler_params=pltpu.CompilerParams(
            dimension_semantics=("parallel", "arbitrary"),
            vmem_limit_bytes=_VMEM_LIMIT),
        cost_estimate=cost,
    )(a, h, b)


# ----------------------------- graph / param preprocessing -----------------

def normalized_adjacency(edge_index, num_nodes):
    """Dense A_hat = D^{-1/2} (A + I) D^{-1/2}, matching PyG gcn_norm.

    edge_index: int32 [2, E], row 0 = source, row 1 = target.
    out[target] += norm * x[source]  =>  A[target, source] = 1 (duplicates accumulate,
    as in PyG scatter-add).  Self loops are added only for nodes that lack one
    (add_remaining_self_loops semantics).
    """
    src = edge_index[0]
    dst = edge_index[1]
    a = jnp.zeros((num_nodes, num_nodes), jnp.float32)
    a = a.at[dst, src].add(1.0)
    diag = jnp.diagonal(a)
    a = a + jnp.diag(jnp.where(diag == 0.0, 1.0, 0.0))
    deg = jnp.sum(a, axis=1)
    d_inv_sqrt = jnp.where(deg > 0, 1.0 / jnp.sqrt(deg), 0.0)
    return d_inv_sqrt[:, None] * a * d_inv_sqrt[None, :]


def prepare_graph(edge_index, num_nodes):
    """Build + zero-pad + bf16-cast the normalized adjacency once per graph."""
    n_pad = _round_up(max(num_nodes, LANE), LANE)
    a = normalized_adjacency(edge_index, num_nodes)
    return _pad2(a, n_pad, n_pad).astype(jnp.bfloat16)


def prepare_params(params):
    """Zero-pad weights/biases to lane-dense (multiple-of-128) shapes; weights in bf16."""
    out = {}
    for wk, bk in (("w1", "b1"), ("w2", "b2"), ("w3", "b3"), ("wl", "bl")):
        w = params[wk]
        fi = _round_up(w.shape[0], LANE)
        fo = _round_up(w.shape[1], LANE)
        out[wk] = _pad2(w, fi, fo).astype(jnp.bfloat16)
        out[bk] = _pad2(params[bk], 1, fo).astype(jnp.float32)
    return out


# ----------------------------- forward pass --------------------------------

@jax.jit
def gcn_forward_padded(x_pad, a_pad, p):
    """Eval-mode forward on padded operands. Dropout(p=0.5, training=False) == identity."""
    def zero_bias(f):
        return jnp.zeros((1, f), jnp.float32)

    # GCNConv1 as (A_hat @ X) @ W1 + b1 (cheaper association: dim_in < 4*dim_h), ReLU.
    ax = _aggregate(a_pad, x_pad, zero_bias(x_pad.shape[1]), relu=False)
    h = _dense(ax, p["w1"], p["b1"], relu=True)

    # GCNConv2: A_hat @ (H @ W2) + b2, ReLU.
    hw = _dense(h, p["w2"], zero_bias(p["w2"].shape[1]), relu=False)
    h = _aggregate(a_pad, hw, p["b2"], relu=True)

    # GCNConv3: A_hat @ (H @ W3) + b3, ReLU.
    hw = _dense(h, p["w3"], zero_bias(p["w3"].shape[1]), relu=False)
    h = _aggregate(a_pad, hw, p["b3"], relu=True)

    # Linear head.
    return _dense(h, p["wl"], p["bl"], relu=False)


def gcn_forward(x, edge_index, params):
    n, dim_in = x.shape
    dim_out = params["wl"].shape[1]
    n_pad = _round_up(max(n, LANE), LANE)

    a_pad = prepare_graph(edge_index, n)      # in practice cache per-graph and reuse
    x_pad = _pad2(x.astype(jnp.float32), n_pad, _round_up(dim_in, LANE))
    p_pad = prepare_params(params)

    out_pad = gcn_forward_padded(x_pad, a_pad, p_pad)
    return out_pad[:n, :dim_out]


# ----------------------------- reference + params --------------------------

def gcn_reference(x, edge_index, params):
    """Pure-JAX f32 reference (same math as the PyTorch module in eval mode)."""
    a = normalized_adjacency(edge_index, x.shape[0])
    h = jnp.maximum(a @ (x @ params["w1"]) + params["b1"], 0.0)
    h = jnp.maximum(a @ (h @ params["w2"]) + params["b2"], 0.0)
    h = jnp.maximum(a @ (h @ params["w3"]) + params["b3"], 0.0)
    return h @ params["wl"] + params["bl"]


def init_params(key, dim_in, dim_h, dim_out):
    """Deterministic synthetic parameters (shapes match the PyTorch module)."""
    ks = jax.random.split(key, 5)

    def lin(kw, fan_in, fan_out):
        scale = 1.0 / (fan_in ** 0.5)
        return jax.random.uniform(kw, (fan_in, fan_out), jnp.float32, -scale, scale)

    return {
        # GCNConv1: dim_in -> dim_h * 4
        "w1": lin(ks[0], dim_in, dim_h * 4),
        "b1": jnp.zeros((1, dim_h * 4), jnp.float32),
        # GCNConv2: dim_h * 4 -> dim_h * 2
        "w2": lin(ks[1], dim_h * 4, dim_h * 2),
        "b2": jnp.zeros((1, dim_h * 2), jnp.float32),
        # GCNConv3: dim_h * 2 -> dim_h
        "w3": lin(ks[2], dim_h * 2, dim_h),
        "b3": jnp.zeros((1, dim_h), jnp.float32),
        # Linear: dim_h -> dim_out
        "wl": lin(ks[3], dim_h, dim_out),
        "bl": jax.random.uniform(ks[4], (1, dim_out), jnp.float32,
                                 -1.0 / (dim_h ** 0.5), 1.0 / (dim_h ** 0.5)),
    }


if __name__ == "__main__":
    N = 8           # number of graph nodes
    DIM_IN = 16
    DIM_H = 8       # hidden widths: 32 -> 16 -> 8
    DIM_OUT = 4

    key = jax.random.PRNGKey(0)
    k_x, k_p = jax.random.split(key)

    # Node features [N, DIM_IN]
    x = jax.random.normal(k_x, (N, DIM_IN), jnp.float32)

    # Deterministic edge_index [2, E]: bidirectional ring graph over N nodes.
    src = jnp.arange(N, dtype=jnp.int32)
    dst = (src + 1) % N
    edge_index = jnp.stack([jnp.concatenate([src, dst]),
                            jnp.concatenate([dst, src])], axis=0)   # [2, 2N]

    params = init_params(k_p, DIM_IN, DIM_H, DIM_OUT)

    out = jax.block_until_ready(gcn_forward(x, edge_index, params))
    ref = jax.block_until_ready(gcn_reference(x, edge_index, params))

    assert out.shape == (N, DIM_OUT)
    assert jnp.all(jnp.isfinite(out))
    max_err = float(jnp.max(jnp.abs(out - ref)))
    assert jnp.allclose(out, ref, rtol=3e-2, atol=3e-2), f"max abs err {max_err}"
    print("KERNEL_OK")
</pallas_src>

<mosaic_0001>
module attributes {stable_mosaic.version = 11 : i64} {
  func.func @_dense_kernel(%arg0: i32, %arg1: memref<128x128xf32, #tpu.memory_space<vmem>>, %arg2: memref<128x128xbf16, #tpu.memory_space<vmem>>, %arg3: memref<1x128xf32, #tpu.memory_space<vmem>>, %arg4: memref<128x128xf32, #tpu.memory_space<vmem>>) attributes {dimension_semantics = [#tpu.dimension_semantics<parallel>], iteration_bounds = array<i64: 1>, scalar_prefetch = 0 : i64, scratch_operands = 0 : i64, tpu.core_type = #tpu.core_type<tc>, window_params = [{transform_indices = @transform_0, window_bounds = array<i64: 128, 128>}, {pipeline_mode = #tpu.pipeline_mode<synchronous>, transform_indices = @transform_1, window_bounds = array<i64: 128, 128>}, {pipeline_mode = #tpu.pipeline_mode<synchronous>, transform_indices = @transform_2, window_bounds = array<i64: 1, 128>}, {transform_indices = @transform_3, window_bounds = array<i64: 128, 128>}]} {
    %c0 = arith.constant 0 : index
    %c0_0 = arith.constant 0 : index
    %0 = vector.load %arg1[%c0, %c0_0] : memref<128x128xf32, #tpu.memory_space<vmem>>, vector<128x128xf32>
    %1 = arith.truncf %0 : vector<128x128xf32> to vector<128x128xbf16>
    %c0_1 = arith.constant 0 : index
    %c0_2 = arith.constant 0 : index
    %2 = vector.load %arg2[%c0_1, %c0_2] : memref<128x128xbf16, #tpu.memory_space<vmem>>, vector<128x128xbf16>
    %cst = arith.constant dense<0.000000e+00> : vector<128x128xf32>
    %3 = tpu.matmul %1, %2, %cst {dimension_numbers = #tpu.dot_dimension_numbers<[1], [0], [0], [1], [0, 0, 1, 1], [], []>} : vector<128x128xbf16>, vector<128x128xbf16>, vector<128x128xf32> -> vector<128x128xf32>
    %c0_3 = arith.constant 0 : index
    %c0_4 = arith.constant 0 : index
    %4 = vector.load %arg3[%c0_3, %c0_4] : memref<1x128xf32, #tpu.memory_space<vmem>>, vector<1x128xf32>
    %5 = vector.broadcast %4 : vector<1x128xf32> to vector<128x128xf32>
    %6 = arith.addf %3, %5 : vector<128x128xf32>
    %c0_5 = arith.constant 0 : index
    %c0_6 = arith.constant 0 : index
    %7 = vector.load %arg4[%c0_5, %c0_6] : memref<128x128xf32, #tpu.memory_space<vmem>>, vector<128x128xf32>
    tpu.vector_store %arg4[%c0_5, %c0_6], %6 {strides = array<i32>} : memref<128x128xf32, #tpu.memory_space<vmem>>, vector<128x128xf32>,
    return
  }
  func.func @transform_0(%arg0: i32) -> (i32, i32) {
    %c0_i32 = arith.constant 0 : i32
    %c0_i32_0 = arith.constant 0 : i32
    return %arg0, %c0_i32 : i32, i32
  }
  func.func @transform_1(%arg0: i32) -> (i32, i32) {
    %c0_i32 = arith.constant 0 : i32
    %c0_i32_0 = arith.constant 0 : i32
    %c0_i32_1 = arith.constant 0 : i32
    return %c0_i32, %c0_i32_0 : i32, i32
  }
  func.func @transform_2(%arg0: i32) -> (i32, i32) {
    %c0_i32 = arith.constant 0 : i32
    %c0_i32_0 = arith.constant 0 : i32
    %c0_i32_1 = arith.constant 0 : i32
    return %c0_i32, %c0_i32_0 : i32, i32
  }
  func.func @transform_3(%arg0: i32) -> (i32, i32) {
    %c0_i32 = arith.constant 0 : i32
    %c0_i32_0 = arith.constant 0 : i32
    return %arg0, %c0_i32 : i32, i32
  }
}

module attributes {stable_mosaic.version = 11 : i64} {
  func.func @_dense_kernel(%arg0: i32, %arg1: memref<128x128xf32, #tpu.memory_space<vmem>>, %arg2: memref<128x128xbf16, #tpu.memory_space<vmem>>, %arg3: memref<1x128xf32, #tpu.memory_space<vmem>>, %arg4: memref<128x128xf32, #tpu.memory_space<vmem>>) attributes {dimension_semantics = [#tpu.dimension_semantics<parallel>], iteration_bounds = array<i64: 1>, scalar_prefetch = 0 : i64, scratch_operands = 0 : i64, tpu.core_type = #tpu.core_type<tc>, window_params = [{transform_indices = @transform_0, window_bounds = array<i64: 128, 128>}, {pipeline_mode = #tpu.pipeline_mode<synchronous>, transform_indices = @transform_1, window_bounds = array<i64: 128, 128>}, {pipeline_mode = #tpu.pipeline_mode<synchronous>, transform_indices = @transform_2, window_bounds = array<i64: 1, 128>}, {transform_indices = @transform_3, window_bounds = array<i64: 128, 128>}]} {
    %c0 = arith.constant 0 : index
    %c0_0 = arith.constant 0 : index
    %0 = vector.load %arg1[%c0, %c0_0] : memref<128x128xf32, #tpu.memory_space<vmem>>, vector<128x128xf32>
    %1 = arith.truncf %0 : vector<128x128xf32> to vector<128x128xbf16>
    %c0_1 = arith.constant 0 : index
    %c0_2 = arith.constant 0 : index
    %2 = vector.load %arg2[%c0_1, %c0_2] : memref<128x128xbf16, #tpu.memory_space<vmem>>, vector<128x128xbf16>
    %cst = arith.constant dense<0.000000e+00> : vector<128x128xf32>
    %3 = tpu.matmul %1, %2, %cst {dimension_numbers = #tpu.dot_dimension_numbers<[1], [0], [0], [1], [0, 0, 1, 1], [], []>} : vector<128x128xbf16>, vector<128x128xbf16>, vector<128x128xf32> -> vector<128x128xf32>
    %c0_3 = arith.constant 0 : index
    %c0_4 = arith.constant 0 : index
    %4 = vector.load %arg3[%c0_3, %c0_4] : memref<1x128xf32, #tpu.memory_space<vmem>>, vector<1x128xf32>
    %5 = vector.broadcast %4 : vector<1x128xf32> to vector<128x128xf32>
    %6 = arith.addf %3, %5 : vector<128x128xf32>
    %cst_5 = arith.constant 0.000000e+00 : f32
    %7 = vector.broadcast %cst_5 : f32 to vector<128x128xf32>
    %8 = arith.maximumf %6, %7 : vector<128x128xf32>
    %c0_6 = arith.constant 0 : index
    %c0_7 = arith.constant 0 : index
    %9 = vector.load %arg4[%c0_6, %c0_7] : memref<128x128xf32, #tpu.memory_space<vmem>>, vector<128x128xf32>
    tpu.vector_store %arg4[%c0_6, %c0_7], %8 {strides = array<i32>} : memref<128x128xf32, #tpu.memory_space<vmem>>, vector<128x128xf32>,
    return
  }
  func.func @transform_0(%arg0: i32) -> (i32, i32) {
    %c0_i32 = arith.constant 0 : i32
    %c0_i32_0 = arith.constant 0 : i32
    return %arg0, %c0_i32 : i32, i32
  }
  func.func @transform_1(%arg0: i32) -> (i32, i32) {
    %c0_i32 = arith.constant 0 : i32
    %c0_i32_0 = arith.constant 0 : i32
    %c0_i32_1 = arith.constant 0 : i32
    return %c0_i32, %c0_i32_0 : i32, i32
  }
  func.func @transform_2(%arg0: i32) -> (i32, i32) {
    %c0_i32 = arith.constant 0 : i32
    %c0_i32_0 = arith.constant 0 : i32
    %c0_i32_1 = arith.constant 0 : i32
    return %c0_i32, %c0_i32_0 : i32, i32
  }
  func.func @transform_3(%arg0: i32) -> (i32, i32) {
    %c0_i32 = arith.constant 0 : i32
    %c0_i32_0 = arith.constant 0 : i32
    return %arg0, %c0_i32 : i32, i32
  }
}

module attributes {stable_mosaic.version = 11 : i64} {
  func.func @_aggregate_kernel(%arg0: i32, %arg1: i32, %arg2: memref<128x128xbf16, #tpu.memory_space<vmem>>, %arg3: memref<128x128xf32, #tpu.memory_space<vmem>>, %arg4: memref<1x128xf32, #tpu.memory_space<vmem>>, %arg5: memref<128x128xf32, #tpu.memory_space<vmem>>, %arg6: memref<128x128xf32, #tpu.memory_space<vmem>>) attributes {dimension_semantics = [#tpu.dimension_semantics<parallel>, #tpu.dimension_semantics<arbitrary>], iteration_bounds = array<i64: 1, 1>, scalar_prefetch = 0 : i64, scratch_operands = 1 : i64, tpu.core_type = #tpu.core_type<tc>, window_params = [{transform_indices = @transform_0, window_bounds = array<i64: 128, 128>}, {transform_indices = @transform_1, window_bounds = array<i64: 128, 128>}, {pipeline_mode = #tpu.pipeline_mode<synchronous>, transform_indices = @transform_2, window_bounds = array<i64: 1, 128>}, {transform_indices = @transform_3, window_bounds = array<i64: 128, 128>}]} {
    %c0_i32 = arith.constant 0 : i32
    %0 = arith.cmpi eq, %arg1, %c0_i32 : i32
    %1 = arith.extui %0 : i1 to i32
    %c0_i32_0 = arith.constant 0 : i32
    %2 = arith.cmpi ne, %1, %c0_i32_0 : i32
    scf.if %2 {
      %cst_10 = arith.constant 0.000000e+00 : f32
      %13 = vector.broadcast %cst_10 : f32 to vector<128x128xf32>
      %c0_11 = arith.constant 0 : index
      %c0_12 = arith.constant 0 : index
      %14 = vector.load %arg6[%c0_11, %c0_12] : memref<128x128xf32, #tpu.memory_space<vmem>>, vector<128x128xf32>
      tpu.vector_store %arg6[%c0_11, %c0_12], %13 {strides = array<i32>} : memref<128x128xf32, #tpu.memory_space<vmem>>, vector<128x128xf32>,
    } else {
    }
    %c0 = arith.constant 0 : index
    %c0_1 = arith.constant 0 : index
    %3 = vector.load %arg6[%c0, %c0_1] : memref<128x128xf32, #tpu.memory_space<vmem>>, vector<128x128xf32>
    %c0_2 = arith.constant 0 : index
    %c0_3 = arith.constant 0 : index
    %4 = vector.load %arg2[%c0_2, %c0_3] : memref<128x128xbf16, #tpu.memory_space<vmem>>, vector<128x128xbf16>
    %c0_4 = arith.constant 0 : index
    %c0_5 = arith.constant 0 : index
    %5 = vector.load %arg3[%c0_4, %c0_5] : memref<128x128xf32, #tpu.memory_space<vmem>>, vector<128x128xf32>
    %6 = arith.truncf %5 : vector<128x128xf32> to vector<128x128xbf16>
    %cst = arith.constant dense<0.000000e+00> : vector<128x128xf32>
    %7 = tpu.matmul %4, %6, %cst {dimension_numbers = #tpu.dot_dimension_numbers<[1], [0], [0], [1], [0, 0, 1, 1], [], []>} : vector<128x128xbf16>, vector<128x128xbf16>, vector<128x128xf32> -> vector<128x128xf32>
    %8 = arith.addf %3, %7 : vector<128x128xf32>
    %c0_6 = arith.constant 0 : index
    %c0_7 = arith.constant 0 : index
    %9 = vector.load %arg6[%c0_6, %c0_7] : memref<128x128xf32, #tpu.memory_space<vmem>>, vector<128x128xf32>
    tpu.vector_store %arg6[%c0_6, %c0_7], %8 {strides = array<i32>} : memref<128x128xf32, #tpu.memory_space<vmem>>, vector<128x128xf32>,
    %c0_i32_8 = arith.constant 0 : i32
    %10 = arith.cmpi eq, %arg1, %c0_i32_8 : i32
    %11 = arith.extui %10 : i1 to i32
    %c0_i32_9 = arith.constant 0 : i32
    %12 = arith.cmpi ne, %11, %c0_i32_9 : i32
    scf.if %12 {
      %c0_10 = arith.constant 0 : index
      %c0_11 = arith.constant 0 : index
      %13 = vector.load %arg6[%c0_10, %c0_11] : memref<128x128xf32, #tpu.memory_space<vmem>>, vector<128x128xf32>
      %c0_12 = arith.constant 0 : index
      %c0_13 = arith.constant 0 : index
      %14 = vector.load %arg4[%c0_12, %c0_13] : memref<1x128xf32, #tpu.memory_space<vmem>>, vector<1x128xf32>
      %15 = vector.broadcast %14 : vector<1x128xf32> to vector<128x128xf32>
      %16 = arith.addf %13, %15 : vector<128x128xf32>
      %c0_14 = arith.constant 0 : index
      %c0_15 = arith.constant 0 : index
      %17 = vector.load %arg5[%c0_14, %c0_15] : memref<128x128xf32, #tpu.memory_space<vmem>>, vector<128x128xf32>
      tpu.vector_store %arg5[%c0_14, %c0_15], %16 {strides = array<i32>} : memref<128x128xf32, #tpu.memory_space<vmem>>, vector<128x128xf32>,
    } else {
    }
    return
  }
  func.func @transform_0(%arg0: i32, %arg1: i32) -> (i32, i32) {
    %c0_i32 = arith.constant 0 : i32
    return %arg0, %arg1 : i32, i32
  }
  func.func @transform_1(%arg0: i32, %arg1: i32) -> (i32, i32) {
    %c0_i32 = arith.constant 0 : i32
    %c0_i32_0 = arith.constant 0 : i32
    return %arg1, %c0_i32 : i32, i32
  }
  func.func @transform_2(%arg0: i32, %arg1: i32) -> (i32, i32) {
    %c0_i32 = arith.constant 0 : i32
    %c0_i32_0 = arith.constant 0 : i32
    %c0_i32_1 = arith.constant 0 : i32
    return %c0_i32, %c0_i32_0 : i32, i32
  }
  func.func @transform_3(%arg0: i32, %arg1: i32) -> (i32, i32) {
    %c0_i32 = arith.constant 0 : i32
    %c0_i32_0 = arith.constant 0 : i32
    return %arg0, %c0_i32 : i32, i32
  }
}

module attributes {stable_mosaic.version = 11 : i64} {
  func.func @_aggregate_kernel(%arg0: i32, %arg1: i32, %arg2: memref<128x128xbf16, #tpu.memory_space<vmem>>, %arg3: memref<128x128xf32, #tpu.memory_space<vmem>>, %arg4: memref<1x128xf32, #tpu.memory_space<vmem>>, %arg5: memref<128x128xf32, #tpu.memory_space<vmem>>, %arg6: memref<128x128xf32, #tpu.memory_space<vmem>>) attributes {dimension_semantics = [#tpu.dimension_semantics<parallel>, #tpu.dimension_semantics<arbitrary>], iteration_bounds = array<i64: 1, 1>, scalar_prefetch = 0 : i64, scratch_operands = 1 : i64, tpu.core_type = #tpu.core_type<tc>, window_params = [{transform_indices = @transform_0, window_bounds = array<i64: 128, 128>}, {transform_indices = @transform_1, window_bounds = array<i64: 128, 128>}, {pipeline_mode = #tpu.pipeline_mode<synchronous>, transform_indices = @transform_2, window_bounds = array<i64: 1, 128>}, {transform_indices = @transform_3, window_bounds = array<i64: 128, 128>}]} {
    %c0_i32 = arith.constant 0 : i32
    %0 = arith.cmpi eq, %arg1, %c0_i32 : i32
    %1 = arith.extui %0 : i1 to i32
    %c0_i32_0 = arith.constant 0 : i32
    %2 = arith.cmpi ne, %1, %c0_i32_0 : i32
    scf.if %2 {
      %cst_10 = arith.constant 0.000000e+00 : f32
      %13 = vector.broadcast %cst_10 : f32 to vector<128x128xf32>
      %c0_11 = arith.constant 0 : index
      %c0_12 = arith.constant 0 : index
      %14 = vector.load %arg6[%c0_11, %c0_12] : memref<128x128xf32, #tpu.memory_space<vmem>>, vector<128x128xf32>
      tpu.vector_store %arg6[%c0_11, %c0_12], %13 {strides = array<i32>} : memref<128x128xf32, #tpu.memory_space<vmem>>, vector<128x128xf32>,
    } else {
    }
    %c0 = arith.constant 0 : index
    %c0_1 = arith.constant 0 : index
    %3 = vector.load %arg6[%c0, %c0_1] : memref<128x128xf32, #tpu.memory_space<vmem>>, vector<128x128xf32>
    %c0_2 = arith.constant 0 : index
    %c0_3 = arith.constant 0 : index
    %4 = vector.load %arg2[%c0_2, %c0_3] : memref<128x128xbf16, #tpu.memory_space<vmem>>, vector<128x128xbf16>
    %c0_4 = arith.constant 0 : index
    %c0_5 = arith.constant 0 : index
    %5 = vector.load %arg3[%c0_4, %c0_5] : memref<128x128xf32, #tpu.memory_space<vmem>>, vector<128x128xf32>
    %6 = arith.truncf %5 : vector<128x128xf32> to vector<128x128xbf16>
    %cst = arith.constant dense<0.000000e+00> : vector<128x128xf32>
    %7 = tpu.matmul %4, %6, %cst {dimension_numbers = #tpu.dot_dimension_numbers<[1], [0], [0], [1], [0, 0, 1, 1], [], []>} : vector<128x128xbf16>, vector<128x128xbf16>, vector<128x128xf32> -> vector<128x128xf32>
    %8 = arith.addf %3, %7 : vector<128x128xf32>
    %c0_6 = arith.constant 0 : index
    %c0_7 = arith.constant 0 : index
    %9 = vector.load %arg6[%c0_6, %c0_7] : memref<128x128xf32, #tpu.memory_space<vmem>>, vector<128x128xf32>
    tpu.vector_store %arg6[%c0_6, %c0_7], %8 {strides = array<i32>} : memref<128x128xf32, #tpu.memory_space<vmem>>, vector<128x128xf32>,
    %c0_i32_8 = arith.constant 0 : i32
    %10 = arith.cmpi eq, %arg1, %c0_i32_8 : i32
    %11 = arith.extui %10 : i1 to i32
    %c0_i32_9 = arith.constant 0 : i32
    %12 = arith.cmpi ne, %11, %c0_i32_9 : i32
    scf.if %12 {
      %c0_10 = arith.constant 0 : index
      %c0_11 = arith.constant 0 : index
      %13 = vector.load %arg6[%c0_10, %c0_11] : memref<128x128xf32, #tpu.memory_space<vmem>>, vector<128x128xf32>
      %c0_12 = arith.constant 0 : index
      %c0_13 = arith.constant 0 : index
      %14 = vector.load %arg4[%c0_12, %c0_13] : memref<1x128xf32, #tpu.memory_space<vmem>>, vector<1x128xf32>
      %15 = vector.broadcast %14 : vector<1x128xf32> to vector<128x128xf32>
      %16 = arith.addf %13, %15 : vector<128x128xf32>
      %cst_14 = arith.constant 0.000000e+00 : f32
      %17 = vector.broadcast %cst_14 : f32 to vector<128x128xf32>
      %18 = arith.maximumf %16, %17 : vector<128x128xf32>
      %c0_15 = arith.constant 0 : index
      %c0_16 = arith.constant 0 : index
      %19 = vector.load %arg5[%c0_15, %c0_16] : memref<128x128xf32, #tpu.memory_space<vmem>>, vector<128x128xf32>
      tpu.vector_store %arg5[%c0_15, %c0_16], %18 {strides = array<i32>} : memref<128x128xf32, #tpu.memory_space<vmem>>, vector<128x128xf32>,
    } else {
    }
    return
  }
  func.func @transform_0(%arg0: i32, %arg1: i32) -> (i32, i32) {
    %c0_i32 = arith.constant 0 : i32
    return %arg0, %arg1 : i32, i32
  }
  func.func @transform_1(%arg0: i32, %arg1: i32) -> (i32, i32) {
    %c0_i32 = arith.constant 0 : i32
    %c0_i32_0 = arith.constant 0 : i32
    return %arg1, %c0_i32 : i32, i32
  }
  func.func @transform_2(%arg0: i32, %arg1: i32) -> (i32, i32) {
    %c0_i32 = arith.constant 0 : i32
    %c0_i32_0 = arith.constant 0 : i32
    %c0_i32_1 = arith.constant 0 : i32
    return %c0_i32, %c0_i32_0 : i32, i32
  }
  func.func @transform_3(%arg0: i32, %arg1: i32) -> (i32, i32) {
    %c0_i32 = arith.constant 0 : i32
    %c0_i32_0 = arith.constant 0 : i32
    return %arg0, %c0_i32 : i32, i32
  }
}

module attributes {stable_mosaic.version = 11 : i64} {
  func.func @_dense_kernel(%arg0: i32, %arg1: memref<128x128xf32, #tpu.memory_space<vmem>>, %arg2: memref<128x128xbf16, #tpu.memory_space<vmem>>, %arg3: memref<1x128xf32, #tpu.memory_space<vmem>>, %arg4: memref<128x128xf32, #tpu.memory_space<vmem>>) attributes {dimension_semantics = [#tpu.dimension_semantics<parallel>], iteration_bounds = array<i64: 1>, scalar_prefetch = 0 : i64, scratch_operands = 0 : i64, tpu.core_type = #tpu.core_type<tc>, window_params = [{transform_indices = @transform_0, window_bounds = array<i64: 128, 128>}, {pipeline_mode = #tpu.pipeline_mode<synchronous>, transform_indices = @transform_1, window_bounds = array<i64: 128, 128>}, {pipeline_mode = #tpu.pipeline_mode<synchronous>, transform_indices = @transform_2, window_bounds = array<i64: 1, 128>}, {transform_indices = @transform_3, window_bounds = array<i64: 128, 128>}]} {
    %c0 = arith.constant 0 : index
    %c0_0 = arith.constant 0 : index
    %0 = vector.load %arg1[%c0, %c0_0] : memref<128x128xf32, #tpu.memory_space<vmem>>, vector<128x128xf32>
    %1 = arith.truncf %0 : vector<128x128xf32> to vector<128x128xbf16>
    %c0_1 = arith.constant 0 : index
    %c0_2 = arith.constant 0 : index
    %2 = vector.load %arg2[%c0_1, %c0_2] : memref<128x128xbf16, #tpu.memory_space<vmem>>, vector<128x128xbf16>
    %cst = arith.constant dense<0.000000e+00> : vector<128x128xf32>
    %3 = tpu.matmul %1, %2, %cst {dimension_numbers = #tpu.dot_dimension_numbers<[1], [0], [0], [1], [0, 0, 1, 1], [], []>} : vector<128x128xbf16>, vector<128x128xbf16>, vector<128x128xf32> -> vector<128x128xf32>
    %c0_3 = arith.constant 0 : index
    %c0_4 = arith.constant 0 : index
    %4 = vector.load %arg3[%c0_3, %c0_4] : memref<1x128xf32, #tpu.memory_space<vmem>>, vector<1x128xf32>
    %5 = vector.broadcast %4 : vector<1x128xf32> to vector<128x128xf32>
    %6 = arith.addf %3, %5 : vector<128x128xf32>
    %c0_5 = arith.constant 0 : index
    %c0_6 = arith.constant 0 : index
    %7 = vector.load %arg4[%c0_5, %c0_6] : memref<128x128xf32, #tpu.memory_space<vmem>>, vector<128x128xf32>
    tpu.vector_store %arg4[%c0_5, %c0_6], %6 {strides = array<i32>} : memref<128x128xf32, #tpu.memory_space<vmem>>, vector<128x128xf32>,
    return
  }
  func.func @transform_0(%arg0: i32) -> (i32, i32) {
    %c0_i32 = arith.constant 0 : i32
    %c0_i32_0 = arith.constant 0 : i32
    return %arg0, %c0_i32 : i32, i32
  }
  func.func @transform_1(%arg0: i32) -> (i32, i32) {
    %c0_i32 = arith.constant 0 : i32
    %c0_i32_0 = arith.constant 0 : i32
    %c0_i32_1 = arith.constant 0 : i32
    return %c0_i32, %c0_i32_0 : i32, i32
  }
  func.func @transform_2(%arg0: i32) -> (i32, i32) {
    %c0_i32 = arith.constant 0 : i32
    %c0_i32_0 = arith.constant 0 : i32
    %c0_i32_1 = arith.constant 0 : i32
    return %c0_i32, %c0_i32_0 : i32, i32
  }
  func.func @transform_3(%arg0: i32) -> (i32, i32) {
    %c0_i32 = arith.constant 0 : i32
    %c0_i32_0 = arith.constant 0 : i32
    return %arg0, %c0_i32 : i32, i32
  }
}

</mosaic_0001>

<bundles_post_ra>
// kernel: gcn_forward_padded.8
= control target key start
LH: loop header
LB: loop body
LE: loop exit
PB: predicated region body
PF: predicated region fallthrough
CT: control target
= control target key end

     0   :  { %s467_s1 = inlined_call_operand.vmem [shape: bf16[128,128], index: 1, kind: input, shape index: {}]   ;;  %s468_s0 = inlined_call_operand.vmem [shape: f32[128,128], index: 0, kind: input, shape index: {}]   ;;  %s469_s2 = inlined_call_operand.vmem [shape: f32[1,128], index: 2, kind: input, shape index: {}]   ;;  %s470_s3 = inlined_call_operand.vmem [shape: f32[128,128], index: 3, kind: output, shape index: {}]  }
   0x1   :  { %v316_v0 = vld [vmem:[%s467_s1 + $0x38] sm:$0xff]   ;;  %v317_v1 = vld [vmem:[%s467_s1 + $0x30] sm:$0xff]   ;;  %v318_v2 = vld [vmem:[%s467_s1 + $0x28] sm:$0xff]  }
   0x2   :  { %268 = vmatprep.subr.bf16.mxu0 %v316_v0  ;;  %300 = vmatprep.subr.bf16.mxu1 %v316_v0  ;;  %v319_v3 = vld [vmem:[%s467_s1 + $0x20] sm:$0xff]   ;;  %v16_v5 = vld [vmem:[%s468_s0 + $0x8] sm:$0xff]  ;;  %v320_v10 = vld [vmem:[%s467_s1 + $0x18] sm:$0xff]  }
   0x3   :  { %269 = vmatpush3.bf16.msra.mxu0 %v316_v0  ;;  %308 = vmatpush3.bf16.msra.mxu1 %v316_v0  ;;  %v15_v4 = vld [vmem:[%s468_s0] sm:$0xff]  ;;  %v24_v8 = vld [vmem:[%s468_s0 + $0x48] sm:$0xff]  ;;  %v321_v11 = vld [vmem:[%s467_s1 + $0x10] sm:$0xff]  }
   0x4   :  { %270 = vmatprep.subr.bf16.mxu0 %v317_v1  ;;  %301 = vmatprep.subr.bf16.mxu1 %v317_v1  ;;  %v23_v6 = vld [vmem:[%s468_s0 + $0x40] sm:$0xff]  ;;  %v31_v7 = vpack.c.bf16 %v16_v5, %v15_v4  ;;  %v322_v12 = vld [vmem:[%s467_s1 + $0x8] sm:$0xff]   ;;  %v17_v14 = vld [vmem:[%s468_s0 + $0x10] sm:$0xff] }
   0x5   :  { %v35_v9 = vpack.c.bf16 %v24_v8, %v23_v6  ;;  %v323_v13 = vld [vmem:[%s467_s1] sm:$0xff]   ;;  %v18_v15 = vld [vmem:[%s468_s0 + $0x18] sm:$0xff]  ;;  %v25_v16 = vld [vmem:[%s468_s0 + $0x50] sm:$0xff] }
   0x6   :  { %284 = vmatprep.mubr.bf16.mxu0 %v31_v7  ;;  %v26_v17 = vld [vmem:[%s468_s0 + $0x58] sm:$0xff]  ;;  %v19_v18 = vld [vmem:[%s468_s0 + $0x20] sm:$0xff]  ;;  %v20_v19 = vld [vmem:[%s468_s0 + $0x28] sm:$0xff]  ;;  %v32_v22 = vpack.c.bf16 %v18_v15, %v17_v14 }
   0x7   :  { %271 = vmatpush3.bf16.msra.mxu0 %v317_v1  ;;  %309 = vmatpush3.bf16.msra.mxu1 %v317_v1  ;;  %v27_v20 = vld [vmem:[%s468_s0 + $0x60] sm:$0xff]  ;;  %v28_v21 = vld [vmem:[%s468_s0 + $0x68] sm:$0xff]  ;;  %v36_v23 = vpack.c.bf16 %v26_v17, %v25_v16  ;;  %v33_v24 = vpack.c.bf16 %v20_v19, %v19_v18  ;;  %v21_v26 = vld [vmem:[%s468_s0 + $0x30] sm:$0xff] }
   0x8   :  { %272 = vmatprep.subr.bf16.mxu0 %v318_v2  ;;  %302 = vmatprep.subr.bf16.mxu1 %v318_v2  ;;  %v37_v25 = vpack.c.bf16 %v28_v21, %v27_v20  ;;  %v22_v27 = vld [vmem:[%s468_s0 + $0x38] sm:$0xff]  ;;  %v29_v28 = vld [vmem:[%s468_s0 + $0x70] sm:$0xff]  ;;  %v243_v32 = vld [vmem:[%s469_s2] ss:$0 sm:$0xff] }
   0x9   :  { %292 = vmatprep.mubr.bf16.mxu1 %v35_v9  ;;  %v30_v29 = vld [vmem:[%s468_s0 + $0x78] sm:$0xff]  ;;  %v34_v30 = vpack.c.bf16 %v22_v27, %v21_v26 }
   0xa   :  { %v38_v31 = vpack.c.bf16 %v30_v29, %v29_v28 }
   0xb   :  { %273 = vmatpush3.bf16.msra.mxu0 %v318_v2  ;;  %310 = vmatpush3.bf16.msra.mxu1 %v318_v2 }
   0xc   :  { %274 = vmatprep.subr.bf16.mxu0 %v319_v3  ;;  %303 = vmatprep.subr.bf16.mxu1 %v319_v3 }
   0xf   :  { %275 = vmatpush3.bf16.msra.mxu0 %v319_v3  ;;  %311 = vmatpush3.bf16.msra.mxu1 %v319_v3 }
  0x10   :  { %276 = vmatprep.subr.bf16.mxu0 %v320_v10  ;;  %304 = vmatprep.subr.bf16.mxu1 %v320_v10 }
  0x13   :  { %277 = vmatpush3.bf16.msra.mxu0 %v320_v10  ;;  %312 = vmatpush3.bf16.msra.mxu1 %v320_v10 }
  0x14   :  { %278 = vmatprep.subr.bf16.mxu0 %v321_v11  ;;  %305 = vmatprep.subr.bf16.mxu1 %v321_v11 }
  0x17   :  { %279 = vmatpush3.bf16.msra.mxu0 %v321_v11  ;;  %313 = vmatpush3.bf16.msra.mxu1 %v321_v11 }
  0x18   :  { %280 = vmatprep.subr.bf16.mxu0 %v322_v12  ;;  %306 = vmatprep.subr.bf16.mxu1 %v322_v12 }
  0x1b   :  { %281 = vmatpush3.bf16.msra.mxu0 %v322_v12  ;;  %314 = vmatpush3.bf16.msra.mxu1 %v322_v12 }
  0x1c   :  { %282 = vmatprep.subr.bf16.mxu0 %v323_v13  ;;  %307 = vmatprep.subr.bf16.mxu1 %v323_v13 }
  0x1f   :  { %283 = vmatpush3.bf16.msra.mxu0 %v323_v13  ;;  %315 = vmatpush3.bf16.msra.mxu1 %v323_v13 }
  0x22   :  { %285 = vmatmul.mubr.bf16.vlgmr.msra.gmra.mxu0 %v32_v22  ;;  %293 = vmatmul.mubr.bf16.vlgmr.msra.gmra.mxu1 %v36_v23 }
  0x23   :  { %288 = vmatprep.mubr.bf16.mxu0 %v33_v24  ;;  %296 = vmatprep.mubr.bf16.mxu1 %v37_v25 }
  0x2a   :  { %289 = vmatmul.mubr.bf16.gmra.mxu0 %v34_v30  ;;  %297 = vmatmul.mubr.bf16.gmra.mxu1 %v38_v31 }
  0xe2   :  { %v286_v33 = vpop.f32.mrf.mxu0  ;;  %v294_v34 = vpop.f32.mrf.mxu1 }
  0xe3   :  { %v153_v35 = vadd.f32 %v286_v33, %v243_v32  ;;  %v185_v36 = vadd.f32 %v294_v34, %v243_v32 }
  0xe4   :  { %v144_v37 = vpop.f32.mrf.mxu0  ;;  %v176_v38 = vpop.f32.mrf.mxu1 }
  0xe5   :  { %v209_v39 = vmax.f32 %v153_v35, 0.0  ;;  %v217_v40 = vmax.f32 %v185_v36, 0.0  ;;  %v145_v41 = vadd.f32 %v243_v32, %v144_v37  ;;  %v177_v42 = vadd.f32 %v243_v32, %v176_v38 }
  0xe6   :  { %v287_v43 = vpop.f32.mrf.mxu0  ;;  %v295_v44 = vpop.f32.mrf.mxu1 }
  0xe7   :  { %225 = vst [vmem:[%s470_s3 + $0x10] sm:$0xff] %v209_v39  ;;  %233 = vst [vmem:[%s470_s3 + $0x50] sm:$0xff] %v217_v40  ;;  %v207_v45 = vmax.f32 %v145_v41, 0.0  ;;  %v215_v46 = vmax.f32 %v177_v42, 0.0  ;;  %v156_v47 = vadd.f32 %v287_v43, %v243_v32  ;;  %v188_v48 = vadd.f32 %v295_v44, %v243_v32 }
  0xe8   :  { %v147_v49 = vpop.f32.mrf.mxu0  ;;  %v179_v50 = vpop.f32.mrf.mxu1 }
  0xe9   :  { %223 = vst [vmem:[%s470_s3] sm:$0xff] %v207_v45  ;;  %231 = vst [vmem:[%s470_s3 + $0x40] sm:$0xff] %v215_v46  ;;  %v210_v51 = vmax.f32 %v156_v47, 0.0  ;;  %v218_v52 = vmax.f32 %v188_v48, 0.0  ;;  %v148_v53 = vadd.f32 %v243_v32, %v147_v49  ;;  %v180_v54 = vadd.f32 %v243_v32, %v179_v50 }
  0xea   :  { %v290_v55 = vpop.f32.mrf.mxu0  ;;  %v298_v56 = vpop.f32.mrf.mxu1 }
  0xeb   :  { %226 = vst [vmem:[%s470_s3 + $0x18] sm:$0xff] %v210_v51  ;;  %234 = vst [vmem:[%s470_s3 + $0x58] sm:$0xff] %v218_v52  ;;  %v208_v57 = vmax.f32 %v148_v53, 0.0  ;;  %v216_v58 = vmax.f32 %v180_v54, 0.0  ;;  %v169_v59 = vadd.f32 %v290_v55, %v243_v32  ;;  %v201_v60 = vadd.f32 %v298_v56, %v243_v32 }
  0xec   :  { %v160_v61 = vpop.f32.mrf.mxu0  ;;  %v192_v62 = vpop.f32.mrf.mxu1 }
  0xed   :  { %224 = vst [vmem:[%s470_s3 + $0x8] sm:$0xff] %v208_v57  ;;  %232 = vst [vmem:[%s470_s3 + $0x48] sm:$0xff] %v216_v58  ;;  %v213_v63 = vmax.f32 %v169_v59, 0.0  ;;  %v221_v0 = vmax.f32 %v201_v60, 0.0  ;;  %v161_v1 = vadd.f32 %v243_v32, %v160_v61  ;;  %v193_v2 = vadd.f32 %v243_v32, %v192_v62 }
  0xee   :  { %v291_v3 = vpop.f32.mrf.mxu0  ;;  %v299_v4 = vpop.f32.mrf.mxu1 }
  0xef   :  { %229 = vst [vmem:[%s470_s3 + $0x30] sm:$0xff] %v213_v63  ;;  %237 = vst [vmem:[%s470_s3 + $0x70] sm:$0xff] %v221_v0  ;;  %v211_v5 = vmax.f32 %v161_v1, 0.0  ;;  %v219_v6 = vmax.f32 %v193_v2, 0.0  ;;  %v172_v7 = vadd.f32 %v291_v3, %v243_v32  ;;  %v204_v8 = vadd.f32 %v299_v4, %v243_v32 }
  0xf0   :  { %v163_v9 = vpop.f32.mrf.mxu0  ;;  %v195_v10 = vpop.f32.mrf.mxu1 }
  0xf1   :  { %227 = vst [vmem:[%s470_s3 + $0x20] sm:$0xff] %v211_v5  ;;  %235 = vst [vmem:[%s470_s3 + $0x60] sm:$0xff] %v219_v6  ;;  %v214_v11 = vmax.f32 %v172_v7, 0.0  ;;  %v222_v12 = vmax.f32 %v204_v8, 0.0  ;;  %v164_v13 = vadd.f32 %v243_v32, %v163_v9  ;;  %v196_v14 = vadd.f32 %v243_v32, %v195_v10 }
  0xf3   :  { %230 = vst [vmem:[%s470_s3 + $0x38] sm:$0xff] %v214_v11  ;;  %238 = vst [vmem:[%s470_s3 + $0x78] sm:$0xff] %v222_v12  ;;  %v212_v15 = vmax.f32 %v164_v13, 0.0  ;;  %v220_v16 = vmax.f32 %v196_v14, 0.0 }
  0xf5   :  { %228 = vst [vmem:[%s470_s3 + $0x28] sm:$0xff] %v212_v15  ;;  %236 = vst [vmem:[%s470_s3 + $0x68] sm:$0xff] %v220_v16 }

// kernel: gcn_forward_padded.9
= control target key start
LH: loop header
LB: loop body
LE: loop exit
PB: predicated region body
PF: predicated region fallthrough
CT: control target
= control target key end

     0   :  { %s451_s1 = inlined_call_operand.vmem [shape: bf16[128,128], index: 1, kind: input, shape index: {}]   ;;  %s452_s0 = inlined_call_operand.vmem [shape: f32[128,128], index: 0, kind: input, shape index: {}]   ;;  %s453_s2 = inlined_call_operand.vmem [shape: f32[1,128], index: 2, kind: input, shape index: {}]   ;;  %s454_s3 = inlined_call_operand.vmem [shape: f32[128,128], index: 3, kind: output, shape index: {}]  }
   0x1   :  { %v300_v0 = vld [vmem:[%s451_s1 + $0x38] sm:$0xff]   ;;  %v301_v1 = vld [vmem:[%s451_s1 + $0x30] sm:$0xff]   ;;  %v302_v2 = vld [vmem:[%s451_s1 + $0x28] sm:$0xff]  }
   0x2   :  { %252 = vmatprep.subr.bf16.mxu0 %v300_v0  ;;  %284 = vmatprep.subr.bf16.mxu1 %v300_v0  ;;  %v303_v3 = vld [vmem:[%s451_s1 + $0x20] sm:$0xff]   ;;  %v16_v5 = vld [vmem:[%s452_s0 + $0x8] sm:$0xff]  ;;  %v304_v10 = vld [vmem:[%s451_s1 + $0x18] sm:$0xff]  }
   0x3   :  { %253 = vmatpush3.bf16.msra.mxu0 %v300_v0  ;;  %292 = vmatpush3.bf16.msra.mxu1 %v300_v0  ;;  %v15_v4 = vld [vmem:[%s452_s0] sm:$0xff]  ;;  %v24_v8 = vld [vmem:[%s452_s0 + $0x48] sm:$0xff]  ;;  %v305_v11 = vld [vmem:[%s451_s1 + $0x10] sm:$0xff]  }
   0x4   :  { %254 = vmatprep.subr.bf16.mxu0 %v301_v1  ;;  %285 = vmatprep.subr.bf16.mxu1 %v301_v1  ;;  %v23_v6 = vld [vmem:[%s452_s0 + $0x40] sm:$0xff]  ;;  %v31_v7 = vpack.c.bf16 %v16_v5, %v15_v4  ;;  %v306_v12 = vld [vmem:[%s451_s1 + $0x8] sm:$0xff]   ;;  %v17_v14 = vld [vmem:[%s452_s0 + $0x10] sm:$0xff] }
   0x5   :  { %v35_v9 = vpack.c.bf16 %v24_v8, %v23_v6  ;;  %v307_v13 = vld [vmem:[%s451_s1] sm:$0xff]   ;;  %v18_v15 = vld [vmem:[%s452_s0 + $0x18] sm:$0xff]  ;;  %v25_v16 = vld [vmem:[%s452_s0 + $0x50] sm:$0xff] }
   0x6   :  { %268 = vmatprep.mubr.bf16.mxu0 %v31_v7  ;;  %v26_v17 = vld [vmem:[%s452_s0 + $0x58] sm:$0xff]  ;;  %v19_v18 = vld [vmem:[%s452_s0 + $0x20] sm:$0xff]  ;;  %v20_v19 = vld [vmem:[%s452_s0 + $0x28] sm:$0xff]  ;;  %v32_v22 = vpack.c.bf16 %v18_v15, %v17_v14 }
   0x7   :  { %255 = vmatpush3.bf16.msra.mxu0 %v301_v1  ;;  %293 = vmatpush3.bf16.msra.mxu1 %v301_v1  ;;  %v27_v20 = vld [vmem:[%s452_s0 + $0x60] sm:$0xff]  ;;  %v28_v21 = vld [vmem:[%s452_s0 + $0x68] sm:$0xff]  ;;  %v36_v23 = vpack.c.bf16 %v26_v17, %v25_v16  ;;  %v33_v24 = vpack.c.bf16 %v20_v19, %v19_v18  ;;  %v21_v26 = vld [vmem:[%s452_s0 + $0x30] sm:$0xff] }
   0x8   :  { %256 = vmatprep.subr.bf16.mxu0 %v302_v2  ;;  %286 = vmatprep.subr.bf16.mxu1 %v302_v2  ;;  %v37_v25 = vpack.c.bf16 %v28_v21, %v27_v20  ;;  %v22_v27 = vld [vmem:[%s452_s0 + $0x38] sm:$0xff]  ;;  %v29_v28 = vld [vmem:[%s452_s0 + $0x70] sm:$0xff]  ;;  %v227_v32 = vld [vmem:[%s453_s2] ss:$0 sm:$0xff] }
   0x9   :  { %276 = vmatprep.mubr.bf16.mxu1 %v35_v9  ;;  %v30_v29 = vld [vmem:[%s452_s0 + $0x78] sm:$0xff]  ;;  %v34_v30 = vpack.c.bf16 %v22_v27, %v21_v26 }
   0xa   :  { %v38_v31 = vpack.c.bf16 %v30_v29, %v29_v28 }
   0xb   :  { %257 = vmatpush3.bf16.msra.mxu0 %v302_v2  ;;  %294 = vmatpush3.bf16.msra.mxu1 %v302_v2 }
   0xc   :  { %258 = vmatprep.subr.bf16.mxu0 %v303_v3  ;;  %287 = vmatprep.subr.bf16.mxu1 %v303_v3 }
   0xf   :  { %259 = vmatpush3.bf16.msra.mxu0 %v303_v3  ;;  %295 = vmatpush3.bf16.msra.mxu1 %v303_v3 }
  0x10   :  { %260 = vmatprep.subr.bf16.mxu0 %v304_v10  ;;  %288 = vmatprep.subr.bf16.mxu1 %v304_v10 }
  0x13   :  { %261 = vmatpush3.bf16.msra.mxu0 %v304_v10  ;;  %296 = vmatpush3.bf16.msra.mxu1 %v304_v10 }
  0x14   :  { %262 = vmatprep.subr.bf16.mxu0 %v305_v11  ;;  %289 = vmatprep.subr.bf16.mxu1 %v305_v11 }
  0x17   :  { %263 = vmatpush3.bf16.msra.mxu0 %v305_v11  ;;  %297 = vmatpush3.bf16.msra.mxu1 %v305_v11 }
  0x18   :  { %264 = vmatprep.subr.bf16.mxu0 %v306_v12  ;;  %290 = vmatprep.subr.bf16.mxu1 %v306_v12 }
  0x1b   :  { %265 = vmatpush3.bf16.msra.mxu0 %v306_v12  ;;  %298 = vmatpush3.bf16.msra.mxu1 %v306_v12 }
  0x1c   :  { %266 = vmatprep.subr.bf16.mxu0 %v307_v13  ;;  %291 = vmatprep.subr.bf16.mxu1 %v307_v13 }
  0x1f   :  { %267 = vmatpush3.bf16.msra.mxu0 %v307_v13  ;;  %299 = vmatpush3.bf16.msra.mxu1 %v307_v13 }
  0x22   :  { %269 = vmatmul.mubr.bf16.vlgmr.msra.gmra.mxu0 %v32_v22  ;;  %277 = vmatmul.mubr.bf16.vlgmr.msra.gmra.mxu1 %v36_v23 }
  0x23   :  { %272 = vmatprep.mubr.bf16.mxu0 %v33_v24  ;;  %280 = vmatprep.mubr.bf16.mxu1 %v37_v25 }
  0x2a   :  { %273 = vmatmul.mubr.bf16.gmra.mxu0 %v34_v30  ;;  %281 = vmatmul.mubr.bf16.gmra.mxu1 %v38_v31 }
  0xe2   :  { %v270_v33 = vpop.f32.mrf.mxu0  ;;  %v278_v34 = vpop.f32.mrf.mxu1 }
  0xe3   :  { %v153_v35 = vadd.f32 %v270_v33, %v227_v32  ;;  %v185_v36 = vadd.f32 %v278_v34, %v227_v32 }
  0xe4   :  { %v144_v37 = vpop.f32.mrf.mxu0  ;;  %v176_v38 = vpop.f32.mrf.mxu1 }
  0xe5   :  { %209 = vst [vmem:[%s454_s3 + $0x10] sm:$0xff] %v153_v35  ;;  %217 = vst [vmem:[%s454_s3 + $0x50] sm:$0xff] %v185_v36  ;;  %v145_v39 = vadd.f32 %v227_v32, %v144_v37  ;;  %v177_v40 = vadd.f32 %v227_v32, %v176_v38 }
  0xe6   :  { %v271_v41 = vpop.f32.mrf.mxu0  ;;  %v279_v42 = vpop.f32.mrf.mxu1 }
  0xe7   :  { %207 = vst [vmem:[%s454_s3] sm:$0xff] %v145_v39  ;;  %215 = vst [vmem:[%s454_s3 + $0x40] sm:$0xff] %v177_v40  ;;  %v156_v43 = vadd.f32 %v271_v41, %v227_v32  ;;  %v188_v44 = vadd.f32 %v279_v42, %v227_v32 }
  0xe8   :  { %v147_v45 = vpop.f32.mrf.mxu0  ;;  %v179_v46 = vpop.f32.mrf.mxu1 }
  0xe9   :  { %210 = vst [vmem:[%s454_s3 + $0x18] sm:$0xff] %v156_v43  ;;  %218 = vst [vmem:[%s454_s3 + $0x58] sm:$0xff] %v188_v44  ;;  %v148_v47 = vadd.f32 %v227_v32, %v147_v45  ;;  %v180_v48 = vadd.f32 %v227_v32, %v179_v46 }
  0xea   :  { %v274_v49 = vpop.f32.mrf.mxu0  ;;  %v282_v50 = vpop.f32.mrf.mxu1 }
  0xeb   :  { %208 = vst [vmem:[%s454_s3 + $0x8] sm:$0xff] %v148_v47  ;;  %216 = vst [vmem:[%s454_s3 + $0x48] sm:$0xff] %v180_v48  ;;  %v169_v51 = vadd.f32 %v274_v49, %v227_v32  ;;  %v201_v52 = vadd.f32 %v282_v50, %v227_v32 }
  0xec   :  { %v160_v53 = vpop.f32.mrf.mxu0  ;;  %v192_v54 = vpop.f32.mrf.mxu1 }
  0xed   :  { %213 = vst [vmem:[%s454_s3 + $0x30] sm:$0xff] %v169_v51  ;;  %221 = vst [vmem:[%s454_s3 + $0x70] sm:$0xff] %v201_v52  ;;  %v161_v55 = vadd.f32 %v227_v32, %v160_v53  ;;  %v193_v56 = vadd.f32 %v227_v32, %v192_v54 }
  0xee   :  { %v275_v57 = vpop.f32.mrf.mxu0  ;;  %v283_v58 = vpop.f32.mrf.mxu1 }
  0xef   :  { %211 = vst [vmem:[%s454_s3 + $0x20] sm:$0xff] %v161_v55  ;;  %219 = vst [vmem:[%s454_s3 + $0x60] sm:$0xff] %v193_v56  ;;  %v172_v59 = vadd.f32 %v275_v57, %v227_v32  ;;  %v204_v60 = vadd.f32 %v283_v58, %v227_v32 }
  0xf0   :  { %v163_v61 = vpop.f32.mrf.mxu0  ;;  %v195_v62 = vpop.f32.mrf.mxu1 }
  0xf1   :  { %214 = vst [vmem:[%s454_s3 + $0x38] sm:$0xff] %v172_v59  ;;  %222 = vst [vmem:[%s454_s3 + $0x78] sm:$0xff] %v204_v60  ;;  %v164_v63 = vadd.f32 %v227_v32, %v163_v61  ;;  %v196_v0 = vadd.f32 %v227_v32, %v195_v62 }
  0xf3   :  { %212 = vst [vmem:[%s454_s3 + $0x28] sm:$0xff] %v164_v63  ;;  %220 = vst [vmem:[%s454_s3 + $0x68] sm:$0xff] %v196_v0 }

// kernel: gcn_forward_padded.7
= control target key start
LH: loop header
LB: loop body
LE: loop exit
PB: predicated region body
PF: predicated region fallthrough
CT: control target
= control target key end

     0   :  { %8 = vsyncpa [#allocation4], 0  ;;  %s574_s0 = inlined_call_operand.hbm [shape: bf16[128,128], index: 0, kind: input, shape index: {}]   ;;  %s575_s1 = inlined_call_operand.hbm [shape: f32[128,128], index: 1, kind: input, shape index: {}]   ;;  %s576_s2 = inlined_call_operand.vmem [shape: f32[1,128], index: 2, kind: input, shape index: {}]   ;;  %s577_s3 = inlined_call_operand.vmem [shape: f32[128,128], index: 3, kind: output, shape index: {}]  }
   0x1   :  { %9 = vsyncpa [#allocation6], 0  ;;  %s491_s12 = smov [#allocation3]  }
   0x2   :  { %s15_s13 = sshll.u32 %s491_s12, 4  ;;  %s16_s13 = int_to_ptr.vmem [resolvable:$true] %s15_s13 }
   0x3   :  { %s455_s14 = scalar_lea.vmem %s16_s13, 1024  ;;  %p460_p1 = scmp.lt.s32.totalorder %s16_s13, %s16_s13 }
   0x4   :  { %p456_p0 = scmp.ne.s32.totalorder %s16_s13, %s455_s14  ;;  %p461_p2 = scmp.lt.s32.totalorder %s455_s14, %s455_s14 }
   0x6   :  { %p462_p3 = por %p461_p2, %p460_p1 }
   0x8   :  { %p463_p4 = pnand %p462_p3, %p456_p0 }
   0xa   :  { %466 = shalt.err (!%p463_p4)
}
   0xb   :  { %s492_s15 = smov 64   ;;  %s493_s16 = smov 4  }
   0xc   :  { %21 = dma.hbm_to_vmem [thread:$0]  %s574_s0, 1024, %s16_s13, [#allocation4], %s492_s15, %s492_s15, %s493_s16  }
   0xd   :  { %s494_s19 = smov [#allocation5]  }
   0xe   :  { %s27_s20 = sshll.u32 %s494_s19, 4  ;;  %s28_s20 = int_to_ptr.vmem [resolvable:$true] %s27_s20 }
   0xf   :  { %s475_s21 = scalar_lea.vmem %s28_s20, 2048  ;;  %p480_p6 = scmp.lt.s32.totalorder %s28_s20, %s28_s20 }
  0x10   :  { %p476_p5 = scmp.ne.s32.totalorder %s28_s20, %s475_s21  ;;  %p481_p7 = scmp.lt.s32.totalorder %s475_s21, %s475_s21 }
  0x12   :  { %p482_p8 = por %p481_p7, %p480_p6 }
  0x14   :  { %p483_p9 = pnand %p482_p8, %p476_p5 }
  0x16   :  { %486 = shalt.err (!%p483_p9)
}
  0x17   :  { %s495_s22 = smov 128   ;;  %s496_s23 = smov 8  }
  0x18   :  { %33 = dma.hbm_to_vmem [thread:$0]  %s575_s1, 2048, %s28_s20, [#allocation6], %s495_s22, %s495_s22, %s496_s23  }
  0x19   :  { %487 = dma.done.wait [#allocation4], 1024  }
  0x1a   :  { %488 = vsyncadd [#allocation4], 4294966272 }
  0x1b   :  { %489 = dma.done.wait [#allocation6], 2048  }
  0x1c   :  { %490 = vsyncadd [#allocation6], 4294965248  ;;  %v109_v0 = vld [vmem:[#allocation5 + $0x70] sm:$0xff]  ;;  %v110_v1 = vld [vmem:[#allocation5 + $0x78] sm:$0xff] }
  0x1d   :  { %v107_v2 = vld [vmem:[#allocation5 + $0x60] sm:$0xff]  ;;  %v118_v3 = vpack.c.bf16 %v110_v1, %v109_v0  ;;  %v108_v4 = vld [vmem:[#allocation5 + $0x68] sm:$0xff]  ;;  %v105_v6 = vld [vmem:[#allocation5 + $0x50] sm:$0xff] }
  0x1e   :  { %v117_v5 = vpack.c.bf16 %v108_v4, %v107_v2  ;;  %v106_v7 = vld [vmem:[#allocation5 + $0x58] sm:$0xff]  ;;  %v103_v8 = vld [vmem:[#allocation5 + $0x40] sm:$0xff]  ;;  %v104_v10 = vld [vmem:[#allocation5 + $0x48] sm:$0xff] }
  0x1f   :  { %385 = vmatprep.subr.bf16.mxu0 %v118_v3  ;;  %417 = vmatprep.subr.bf16.mxu1 %v118_v3  ;;  %v116_v9 = vpack.c.bf16 %v106_v7, %v105_v6  ;;  %v439_v11 = vld [vmem:[#allocation3] sm:$0xff]   ;;  %v115_v13 = vpack.c.bf16 %v104_v10, %v103_v8  ;;  %v101_v14 = vld [vmem:[#allocation5 + $0x30] sm:$0xff]  ;;  %v102_v15 = vld [vmem:[#allocation5 + $0x38] sm:$0xff] }
  0x20   :  { %386 = vmatpush3.bf16.msra.mxu0 %v118_v3  ;;  %425 = vmatpush3.bf16.msra.mxu1 %v118_v3  ;;  %v440_v12 = vld [vmem:[#allocation3 + $0x20] sm:$0xff]   ;;  %v114_v16 = vpack.c.bf16 %v102_v15, %v101_v14  ;;  %v100_v18 = vld [vmem:[#allocation5 + $0x28] sm:$0xff]  ;;  %v97_v20 = vld [vmem:[#allocation5 + $0x10] sm:$0xff] }
  0x21   :  { %387 = vmatprep.subr.bf16.mxu0 %v117_v5  ;;  %418 = vmatprep.subr.bf16.mxu1 %v117_v5  ;;  %v99_v17 = vld [vmem:[#allocation5 + $0x20] sm:$0xff]  ;;  %v98_v21 = vld [vmem:[#allocation5 + $0x18] sm:$0xff]  ;;  %v96_v24 = vld [vmem:[#allocation5 + $0x8] sm:$0xff] }
  0x22   :  { %401 = vmatprep.mubr.bf16.mxu0 %v439_v11  ;;  %409 = vmatprep.mubr.bf16.mxu1 %v440_v12  ;;  %v113_v19 = vpack.c.bf16 %v100_v18, %v99_v17  ;;  %v112_v22 = vpack.c.bf16 %v98_v21, %v97_v20  ;;  %v95_v23 = vld [vmem:[#allocation5] sm:$0xff]  ;;  %v441_v26 = vld [vmem:[#allocation3 + $0x8] sm:$0xff]   ;;  %v443_v28 = vld [vmem:[#allocation3 + $0x10] sm:$0xff]  }
  0x23   :  { %v111_v25 = vpack.c.bf16 %v96_v24, %v95_v23  ;;  %v442_v27 = vld [vmem:[#allocation3 + $0x28] sm:$0xff]   ;;  %v444_v29 = vld [vmem:[#allocation3 + $0x30] sm:$0xff]   ;;  %v445_v30 = vld [vmem:[#allocation3 + $0x18] sm:$0xff]  }
  0x24   :  { %388 = vmatpush3.bf16.msra.mxu0 %v117_v5  ;;  %426 = vmatpush3.bf16.msra.mxu1 %v117_v5  ;;  %v446_v31 = vld [vmem:[#allocation3 + $0x38] sm:$0xff]   ;;  %v368_v32 = vld [vmem:[%s576_s2] ss:$0 sm:$0xff] }
  0x25   :  { %389 = vmatprep.subr.bf16.mxu0 %v116_v9  ;;  %419 = vmatprep.subr.bf16.mxu1 %v116_v9 }
  0x28   :  { %390 = vmatpush3.bf16.msra.mxu0 %v116_v9  ;;  %427 = vmatpush3.bf16.msra.mxu1 %v116_v9 }
  0x29   :  { %391 = vmatprep.subr.bf16.mxu0 %v115_v13  ;;  %420 = vmatprep.subr.bf16.mxu1 %v115_v13 }
  0x2c   :  { %392 = vmatpush3.bf16.msra.mxu0 %v115_v13  ;;  %428 = vmatpush3.bf16.msra.mxu1 %v115_v13 }
  0x2d   :  { %393 = vmatprep.subr.bf16.mxu0 %v114_v16  ;;  %421 = vmatprep.subr.bf16.mxu1 %v114_v16 }
  0x30   :  { %394 = vmatpush3.bf16.msra.mxu0 %v114_v16  ;;  %429 = vmatpush3.bf16.msra.mxu1 %v114_v16 }
  0x31   :  { %395 = vmatprep.subr.bf16.mxu0 %v113_v19  ;;  %422 = vmatprep.subr.bf16.mxu1 %v113_v19 }
  0x34   :  { %396 = vmatpush3.bf16.msra.mxu0 %v113_v19  ;;  %430 = vmatpush3.bf16.msra.mxu1 %v113_v19 }
  0x35   :  { %397 = vmatprep.subr.bf16.mxu0 %v112_v22  ;;  %423 = vmatprep.subr.bf16.mxu1 %v112_v22 }
  0x38   :  { %398 = vmatpush3.bf16.msra.mxu0 %v112_v22  ;;  %431 = vmatpush3.bf16.msra.mxu1 %v112_v22 }
  0x39   :  { %399 = vmatprep.subr.bf16.mxu0 %v111_v25  ;;  %424 = vmatprep.subr.bf16.mxu1 %v111_v25 }
  0x3c   :  { %400 = vmatpush3.bf16.msra.mxu0 %v111_v25  ;;  %432 = vmatpush3.bf16.msra.mxu1 %v111_v25 }
  0x3f   :  { %402 = vmatmul.mubr.bf16.vlgmr.msra.gmra.mxu0 %v441_v26  ;;  %410 = vmatmul.mubr.bf16.vlgmr.msra.gmra.mxu1 %v442_v27 }
  0x40   :  { %405 = vmatprep.mubr.bf16.mxu0 %v443_v28  ;;  %413 = vmatprep.mubr.bf16.mxu1 %v444_v29 }
  0x47   :  { %406 = vmatmul.mubr.bf16.gmra.mxu0 %v445_v30  ;;  %414 = vmatmul.mubr.bf16.gmra.mxu1 %v446_v31 }
  0xff   :  { %v403_v33 = vpop.f32.mrf.mxu0  ;;  %v411_v34 = vpop.f32.mrf.mxu1 }
 0x100   :  { %v324_v35 = vadd.f32 %v403_v33, %v368_v32  ;;  %v332_v36 = vadd.f32 %v411_v34, %v368_v32 }
 0x101   :  { %v201_v37 = vpop.f32.mrf.mxu0  ;;  %v233_v38 = vpop.f32.mrf.mxu1 }
 0x102   :  { %340 = vst [vmem:[%s577_s3 + $0x10] sm:$0xff] %v324_v35  ;;  %348 = vst [vmem:[%s577_s3 + $0x50] sm:$0xff] %v332_v36  ;;  %v322_v39 = vadd.f32 %v368_v32, %v201_v37  ;;  %v330_v40 = vadd.f32 %v368_v32, %v233_v38 }
 0x103   :  { %v404_v41 = vpop.f32.mrf.mxu0  ;;  %v412_v42 = vpop.f32.mrf.mxu1 }
 0x104   :  { %338 = vst [vmem:[%s577_s3] sm:$0xff] %v322_v39  ;;  %346 = vst [vmem:[%s577_s3 + $0x40] sm:$0xff] %v330_v40  ;;  %v325_v43 = vadd.f32 %v404_v41, %v368_v32  ;;  %v333_v44 = vadd.f32 %v412_v42, %v368_v32 }
 0x105   :  { %v204_v45 = vpop.f32.mrf.mxu0  ;;  %v236_v46 = vpop.f32.mrf.mxu1 }
 0x106   :  { %341 = vst [vmem:[%s577_s3 + $0x18] sm:$0xff] %v325_v43  ;;  %349 = vst [vmem:[%s577_s3 + $0x58] sm:$0xff] %v333_v44  ;;  %v323_v47 = vadd.f32 %v368_v32, %v204_v45  ;;  %v331_v48 = vadd.f32 %v368_v32, %v236_v46 }
 0x107   :  { %v407_v49 = vpop.f32.mrf.mxu0  ;;  %v415_v50 = vpop.f32.mrf.mxu1 }
 0x108   :  { %339 = vst [vmem:[%s577_s3 + $0x8] sm:$0xff] %v323_v47  ;;  %347 = vst [vmem:[%s577_s3 + $0x48] sm:$0xff] %v331_v48  ;;  %v328_v51 = vadd.f32 %v407_v49, %v368_v32  ;;  %v336_v52 = vadd.f32 %v415_v50, %v368_v32 }
 0x109   :  { %v217_v53 = vpop.f32.mrf.mxu0  ;;  %v249_v54 = vpop.f32.mrf.mxu1 }
 0x10a   :  { %344 = vst [vmem:[%s577_s3 + $0x30] sm:$0xff] %v328_v51  ;;  %352 = vst [vmem:[%s577_s3 + $0x70] sm:$0xff] %v336_v52  ;;  %v326_v55 = vadd.f32 %v368_v32, %v217_v53  ;;  %v334_v56 = vadd.f32 %v368_v32, %v249_v54 }
 0x10b   :  { %v408_v57 = vpop.f32.mrf.mxu0  ;;  %v416_v58 = vpop.f32.mrf.mxu1 }
 0x10c   :  { %342 = vst [vmem:[%s577_s3 + $0x20] sm:$0xff] %v326_v55  ;;  %350 = vst [vmem:[%s577_s3 + $0x60] sm:$0xff] %v334_v56  ;;  %v329_v59 = vadd.f32 %v408_v57, %v368_v32  ;;  %v337_v60 = vadd.f32 %v416_v58, %v368_v32 }
 0x10d   :  { %v220_v61 = vpop.f32.mrf.mxu0  ;;  %v252_v62 = vpop.f32.mrf.mxu1 }
 0x10e   :  { %345 = vst [vmem:[%s577_s3 + $0x38] sm:$0xff] %v329_v59  ;;  %353 = vst [vmem:[%s577_s3 + $0x78] sm:$0xff] %v337_v60  ;;  %v327_v63 = vadd.f32 %v368_v32, %v220_v61  ;;  %v335_v0 = vadd.f32 %v368_v32, %v252_v62 }
 0x110   :  { %343 = vst [vmem:[%s577_s3 + $0x28] sm:$0xff] %v327_v63  ;;  %351 = vst [vmem:[%s577_s3 + $0x68] sm:$0xff] %v335_v0 }
 0x111   :  { %358 = vsyncpa [#allocation4], 1 }
 0x112   :  { %359 = vsyncpa [#allocation6], 1 }

// kernel: gcn_forward_padded.10
= control target key start
LH: loop header
LB: loop body
LE: loop exit
PB: predicated region body
PF: predicated region fallthrough
CT: control target
= control target key end

     0   :  { %s570_s1 = inlined_call_operand.vmem [shape: f32[128,128], index: 1, kind: input, shape index: {}]   ;;  %s571_s0 = inlined_call_operand.vmem [shape: bf16[128,128], index: 0, kind: input, shape index: {}]   ;;  %s572_s2 = inlined_call_operand.vmem [shape: f32[1,128], index: 2, kind: input, shape index: {}]   ;;  %s573_s3 = inlined_call_operand.vmem [shape: f32[128,128], index: 3, kind: output, shape index: {}]  }
   0x1   :  { %v81_v0 = vld [vmem:[%s570_s1 + $0x70] sm:$0xff]  ;;  %v82_v1 = vld [vmem:[%s570_s1 + $0x78] sm:$0xff]  ;;  %v79_v2 = vld [vmem:[%s570_s1 + $0x60] sm:$0xff] }
   0x2   :  { %v90_v3 = vpack.c.bf16 %v82_v1, %v81_v0  ;;  %v80_v4 = vld [vmem:[%s570_s1 + $0x68] sm:$0xff]  ;;  %v77_v6 = vld [vmem:[%s570_s1 + $0x50] sm:$0xff]  ;;  %v78_v7 = vld [vmem:[%s570_s1 + $0x58] sm:$0xff] }
   0x3   :  { %v89_v5 = vpack.c.bf16 %v80_v4, %v79_v2  ;;  %v75_v8 = vld [vmem:[%s570_s1 + $0x40] sm:$0xff]  ;;  %v88_v9 = vpack.c.bf16 %v78_v7, %v77_v6  ;;  %v76_v10 = vld [vmem:[%s570_s1 + $0x48] sm:$0xff]  ;;  %v73_v14 = vld [vmem:[%s570_s1 + $0x30] sm:$0xff] }
   0x4   :  { %371 = vmatprep.subr.bf16.mxu0 %v90_v3  ;;  %403 = vmatprep.subr.bf16.mxu1 %v90_v3  ;;  %v419_v11 = vld [vmem:[%s571_s0] sm:$0xff]   ;;  %v87_v13 = vpack.c.bf16 %v76_v10, %v75_v8  ;;  %v74_v15 = vld [vmem:[%s570_s1 + $0x38] sm:$0xff]  ;;  %v72_v18 = vld [vmem:[%s570_s1 + $0x28] sm:$0xff] }
   0x5   :  { %372 = vmatpush3.bf16.msra.mxu0 %v90_v3  ;;  %411 = vmatpush3.bf16.msra.mxu1 %v90_v3  ;;  %v420_v12 = vld [vmem:[%s571_s0 + $0x20] sm:$0xff]   ;;  %v86_v16 = vpack.c.bf16 %v74_v15, %v73_v14  ;;  %v69_v20 = vld [vmem:[%s570_s1 + $0x10] sm:$0xff]  ;;  %v70_v21 = vld [vmem:[%s570_s1 + $0x18] sm:$0xff] }
   0x6   :  { %373 = vmatprep.subr.bf16.mxu0 %v89_v5  ;;  %404 = vmatprep.subr.bf16.mxu1 %v89_v5  ;;  %v71_v17 = vld [vmem:[%s570_s1 + $0x20] sm:$0xff]  ;;  %v84_v22 = vpack.c.bf16 %v70_v21, %v69_v20  ;;  %v68_v24 = vld [vmem:[%s570_s1 + $0x8] sm:$0xff]  ;;  %v423_v28 = vld [vmem:[%s571_s0 + $0x10] sm:$0xff]  }
   0x7   :  { %387 = vmatprep.mubr.bf16.mxu0 %v419_v11  ;;  %395 = vmatprep.mubr.bf16.mxu1 %v420_v12  ;;  %v85_v19 = vpack.c.bf16 %v72_v18, %v71_v17  ;;  %v67_v23 = vld [vmem:[%s570_s1] sm:$0xff]  ;;  %v421_v26 = vld [vmem:[%s571_s0 + $0x8] sm:$0xff]   ;;  %v424_v29 = vld [vmem:[%s571_s0 + $0x30] sm:$0xff]  }
   0x8   :  { %v83_v25 = vpack.c.bf16 %v68_v24, %v67_v23  ;;  %v422_v27 = vld [vmem:[%s571_s0 + $0x28] sm:$0xff]   ;;  %v425_v30 = vld [vmem:[%s571_s0 + $0x18] sm:$0xff]   ;;  %v354_v32 = vld [vmem:[%s572_s2] ss:$0 sm:$0xff] }
   0x9   :  { %374 = vmatpush3.bf16.msra.mxu0 %v89_v5  ;;  %412 = vmatpush3.bf16.msra.mxu1 %v89_v5  ;;  %v426_v31 = vld [vmem:[%s571_s0 + $0x38] sm:$0xff]  }
   0xa   :  { %375 = vmatprep.subr.bf16.mxu0 %v88_v9  ;;  %405 = vmatprep.subr.bf16.mxu1 %v88_v9 }
   0xd   :  { %376 = vmatpush3.bf16.msra.mxu0 %v88_v9  ;;  %413 = vmatpush3.bf16.msra.mxu1 %v88_v9 }
   0xe   :  { %377 = vmatprep.subr.bf16.mxu0 %v87_v13  ;;  %406 = vmatprep.subr.bf16.mxu1 %v87_v13 }
  0x11   :  { %378 = vmatpush3.bf16.msra.mxu0 %v87_v13  ;;  %414 = vmatpush3.bf16.msra.mxu1 %v87_v13 }
  0x12   :  { %379 = vmatprep.subr.bf16.mxu0 %v86_v16  ;;  %407 = vmatprep.subr.bf16.mxu1 %v86_v16 }
  0x15   :  { %380 = vmatpush3.bf16.msra.mxu0 %v86_v16  ;;  %415 = vmatpush3.bf16.msra.mxu1 %v86_v16 }
  0x16   :  { %381 = vmatprep.subr.bf16.mxu0 %v85_v19  ;;  %408 = vmatprep.subr.bf16.mxu1 %v85_v19 }
  0x19   :  { %382 = vmatpush3.bf16.msra.mxu0 %v85_v19  ;;  %416 = vmatpush3.bf16.msra.mxu1 %v85_v19 }
  0x1a   :  { %383 = vmatprep.subr.bf16.mxu0 %v84_v22  ;;  %409 = vmatprep.subr.bf16.mxu1 %v84_v22 }
  0x1d   :  { %384 = vmatpush3.bf16.msra.mxu0 %v84_v22  ;;  %417 = vmatpush3.bf16.msra.mxu1 %v84_v22 }
  0x1e   :  { %385 = vmatprep.subr.bf16.mxu0 %v83_v25  ;;  %410 = vmatprep.subr.bf16.mxu1 %v83_v25 }
  0x21   :  { %386 = vmatpush3.bf16.msra.mxu0 %v83_v25  ;;  %418 = vmatpush3.bf16.msra.mxu1 %v83_v25 }
  0x24   :  { %388 = vmatmul.mubr.bf16.vlgmr.msra.gmra.mxu0 %v421_v26  ;;  %396 = vmatmul.mubr.bf16.vlgmr.msra.gmra.mxu1 %v422_v27 }
  0x25   :  { %391 = vmatprep.mubr.bf16.mxu0 %v423_v28  ;;  %399 = vmatprep.mubr.bf16.mxu1 %v424_v29 }
  0x2c   :  { %392 = vmatmul.mubr.bf16.gmra.mxu0 %v425_v30  ;;  %400 = vmatmul.mubr.bf16.gmra.mxu1 %v426_v31 }
  0xe4   :  { %v389_v33 = vpop.f32.mrf.mxu0  ;;  %v397_v34 = vpop.f32.mrf.mxu1 }
  0xe5   :  { %v296_v35 = vadd.f32 %v389_v33, %v354_v32  ;;  %v304_v36 = vadd.f32 %v397_v34, %v354_v32 }
  0xe6   :  { %v173_v37 = vpop.f32.mrf.mxu0  ;;  %v205_v38 = vpop.f32.mrf.mxu1 }
  0xe7   :  { %v312_v39 = vmax.f32 %v296_v35, 0.0  ;;  %v320_v40 = vmax.f32 %v304_v36, 0.0  ;;  %v294_v41 = vadd.f32 %v354_v32, %v173_v37  ;;  %v302_v42 = vadd.f32 %v354_v32, %v205_v38 }
  0xe8   :  { %v390_v43 = vpop.f32.mrf.mxu0  ;;  %v398_v44 = vpop.f32.mrf.mxu1 }
  0xe9   :  { %328 = vst [vmem:[%s573_s3 + $0x10] sm:$0xff] %v312_v39  ;;  %336 = vst [vmem:[%s573_s3 + $0x50] sm:$0xff] %v320_v40  ;;  %v310_v45 = vmax.f32 %v294_v41, 0.0  ;;  %v318_v46 = vmax.f32 %v302_v42, 0.0  ;;  %v297_v47 = vadd.f32 %v390_v43, %v354_v32  ;;  %v305_v48 = vadd.f32 %v398_v44, %v354_v32 }
  0xea   :  { %v176_v49 = vpop.f32.mrf.mxu0  ;;  %v208_v50 = vpop.f32.mrf.mxu1 }
  0xeb   :  { %326 = vst [vmem:[%s573_s3] sm:$0xff] %v310_v45  ;;  %334 = vst [vmem:[%s573_s3 + $0x40] sm:$0xff] %v318_v46  ;;  %v313_v51 = vmax.f32 %v297_v47, 0.0  ;;  %v321_v52 = vmax.f32 %v305_v48, 0.0  ;;  %v295_v53 = vadd.f32 %v354_v32, %v176_v49  ;;  %v303_v54 = vadd.f32 %v354_v32, %v208_v50 }
  0xec   :  { %v393_v55 = vpop.f32.mrf.mxu0  ;;  %v401_v56 = vpop.f32.mrf.mxu1 }
  0xed   :  { %329 = vst [vmem:[%s573_s3 + $0x18] sm:$0xff] %v313_v51  ;;  %337 = vst [vmem:[%s573_s3 + $0x58] sm:$0xff] %v321_v52  ;;  %v311_v57 = vmax.f32 %v295_v53, 0.0  ;;  %v319_v58 = vmax.f32 %v303_v54, 0.0  ;;  %v300_v59 = vadd.f32 %v393_v55, %v354_v32  ;;  %v308_v60 = vadd.f32 %v401_v56, %v354_v32 }
  0xee   :  { %v189_v61 = vpop.f32.mrf.mxu0  ;;  %v221_v62 = vpop.f32.mrf.mxu1 }
  0xef   :  { %327 = vst [vmem:[%s573_s3 + $0x8] sm:$0xff] %v311_v57  ;;  %335 = vst [vmem:[%s573_s3 + $0x48] sm:$0xff] %v319_v58  ;;  %v316_v63 = vmax.f32 %v300_v59, 0.0  ;;  %v324_v0 = vmax.f32 %v308_v60, 0.0  ;;  %v298_v1 = vadd.f32 %v354_v32, %v189_v61  ;;  %v306_v2 = vadd.f32 %v354_v32, %v221_v62 }
  0xf0   :  { %v394_v3 = vpop.f32.mrf.mxu0  ;;  %v402_v4 = vpop.f32.mrf.mxu1 }
  0xf1   :  { %332 = vst [vmem:[%s573_s3 + $0x30] sm:$0xff] %v316_v63  ;;  %340 = vst [vmem:[%s573_s3 + $0x70] sm:$0xff] %v324_v0  ;;  %v314_v5 = vmax.f32 %v298_v1, 0.0  ;;  %v322_v6 = vmax.f32 %v306_v2, 0.0  ;;  %v301_v7 = vadd.f32 %v394_v3, %v354_v32  ;;  %v309_v8 = vadd.f32 %v402_v4, %v354_v32 }
  0xf2   :  { %v192_v9 = vpop.f32.mrf.mxu0  ;;  %v224_v10 = vpop.f32.mrf.mxu1 }
  0xf3   :  { %330 = vst [vmem:[%s573_s3 + $0x20] sm:$0xff] %v314_v5  ;;  %338 = vst [vmem:[%s573_s3 + $0x60] sm:$0xff] %v322_v6  ;;  %v317_v11 = vmax.f32 %v301_v7, 0.0  ;;  %v325_v12 = vmax.f32 %v309_v8, 0.0  ;;  %v299_v13 = vadd.f32 %v354_v32, %v192_v9  ;;  %v307_v14 = vadd.f32 %v354_v32, %v224_v10 }
  0xf5   :  { %333 = vst [vmem:[%s573_s3 + $0x38] sm:$0xff] %v317_v11  ;;  %341 = vst [vmem:[%s573_s3 + $0x78] sm:$0xff] %v325_v12  ;;  %v315_v15 = vmax.f32 %v299_v13, 0.0  ;;  %v323_v16 = vmax.f32 %v307_v14, 0.0 }
  0xf7   :  { %331 = vst [vmem:[%s573_s3 + $0x28] sm:$0xff] %v315_v15  ;;  %339 = vst [vmem:[%s573_s3 + $0x68] sm:$0xff] %v323_v16 }

// kernel: gcn_forward_padded.13
= control target key start
LH: loop header
LB: loop body
LE: loop exit
PB: predicated region body
PF: predicated region fallthrough
CT: control target
= control target key end

     0   :  { %s447_s0 = inlined_call_operand.vmem [shape: f32[128,128], index: 0, kind: input, shape index: {}]   ;;  %s448_s1 = inlined_call_operand.vmem [shape: bf16[128,128], index: 1, kind: input, shape index: {}]   ;;  %s449_s2 = inlined_call_operand.vmem [shape: f32[1,128], index: 2, kind: input, shape index: {}]   ;;  %s450_s3 = inlined_call_operand.hbm [shape: f32[128,128], index: 3, kind: output, shape index: {}]  }
   0x1   :  { %v316_v0 = vld [vmem:[%s448_s1 + $0x38] sm:$0xff]   ;;  %v317_v1 = vld [vmem:[%s448_s1 + $0x30] sm:$0xff]   ;;  %v318_v2 = vld [vmem:[%s448_s1 + $0x28] sm:$0xff]  }
   0x2   :  { %265 = vmatprep.subr.bf16.mxu0 %v316_v0  ;;  %297 = vmatprep.subr.bf16.mxu1 %v316_v0  ;;  %v319_v3 = vld [vmem:[%s448_s1 + $0x20] sm:$0xff]   ;;  %v17_v5 = vld [vmem:[%s447_s0 + $0x8] sm:$0xff]  ;;  %v320_v10 = vld [vmem:[%s448_s1 + $0x18] sm:$0xff]  }
   0x3   :  { %266 = vmatpush3.bf16.msra.mxu0 %v316_v0  ;;  %305 = vmatpush3.bf16.msra.mxu1 %v316_v0  ;;  %v16_v4 = vld [vmem:[%s447_s0] sm:$0xff]  ;;  %v25_v8 = vld [vmem:[%s447_s0 + $0x48] sm:$0xff] }
   0x4   :  { %267 = vmatprep.subr.bf16.mxu0 %v317_v1  ;;  %298 = vmatprep.subr.bf16.mxu1 %v317_v1  ;;  %v24_v6 = vld [vmem:[%s447_s0 + $0x40] sm:$0xff]  ;;  %v32_v7 = vpack.c.bf16 %v17_v5, %v16_v4 }
   0x5   :  { %v36_v9 = vpack.c.bf16 %v25_v8, %v24_v6 }
   0x6   :  { %281 = vmatprep.mubr.bf16.mxu0 %v32_v7 }
   0x7   :  { %268 = vmatpush3.bf16.msra.mxu0 %v317_v1  ;;  %306 = vmatpush3.bf16.msra.mxu1 %v317_v1 }
   0x8   :  { %269 = vmatprep.subr.bf16.mxu0 %v318_v2  ;;  %299 = vmatprep.subr.bf16.mxu1 %v318_v2 }
   0x9   :  { %289 = vmatprep.mubr.bf16.mxu1 %v36_v9 }
   0xb   :  { %270 = vmatpush3.bf16.msra.mxu0 %v318_v2  ;;  %307 = vmatpush3.bf16.msra.mxu1 %v318_v2 }
   0xc   :  { %271 = vmatprep.subr.bf16.mxu0 %v319_v3  ;;  %300 = vmatprep.subr.bf16.mxu1 %v319_v3 }
   0xd   :  { %8 = vsyncpa [#allocation3], 0  ;;  %v321_v11 = vld [vmem:[%s448_s1 + $0x10] sm:$0xff]   ;;  %v322_v12 = vld [vmem:[%s448_s1 + $0x8] sm:$0xff]  }
   0xe   :  { %v323_v13 = vld [vmem:[%s448_s1] sm:$0xff]   ;;  %v18_v14 = vld [vmem:[%s447_s0 + $0x10] sm:$0xff]  ;;  %v19_v15 = vld [vmem:[%s447_s0 + $0x18] sm:$0xff] }
   0xf   :  { %272 = vmatpush3.bf16.msra.mxu0 %v319_v3  ;;  %308 = vmatpush3.bf16.msra.mxu1 %v319_v3  ;;  %v26_v16 = vld [vmem:[%s447_s0 + $0x50] sm:$0xff]  ;;  %v27_v17 = vld [vmem:[%s447_s0 + $0x58] sm:$0xff]  ;;  %v20_v18 = vld [vmem:[%s447_s0 + $0x20] sm:$0xff]  ;;  %v33_v22 = vpack.c.bf16 %v19_v15, %v18_v14 }
  0x10   :  { %273 = vmatprep.subr.bf16.mxu0 %v320_v10  ;;  %301 = vmatprep.subr.bf16.mxu1 %v320_v10  ;;  %v21_v19 = vld [vmem:[%s447_s0 + $0x28] sm:$0xff]  ;;  %v28_v20 = vld [vmem:[%s447_s0 + $0x60] sm:$0xff]  ;;  %v37_v23 = vpack.c.bf16 %v27_v17, %v26_v16  ;;  %v22_v26 = vld [vmem:[%s447_s0 + $0x30] sm:$0xff] }
  0x11   :  { %v29_v21 = vld [vmem:[%s447_s0 + $0x68] sm:$0xff]  ;;  %v34_v24 = vpack.c.bf16 %v21_v19, %v20_v18  ;;  %v23_v27 = vld [vmem:[%s447_s0 + $0x38] sm:$0xff]  ;;  %v30_v28 = vld [vmem:[%s447_s0 + $0x70] sm:$0xff] }
  0x12   :  { %v38_v25 = vpack.c.bf16 %v29_v21, %v28_v20  ;;  %v31_v29 = vld [vmem:[%s447_s0 + $0x78] sm:$0xff]  ;;  %v35_v30 = vpack.c.bf16 %v23_v27, %v22_v26  ;;  %v240_v32 = vld [vmem:[%s449_s2] ss:$0 sm:$0xff]  ;;  %s346_s0 = smov [#allocation2]  }
  0x13   :  { %274 = vmatpush3.bf16.msra.mxu0 %v320_v10  ;;  %309 = vmatpush3.bf16.msra.mxu1 %v320_v10  ;;  %v39_v31 = vpack.c.bf16 %v31_v29, %v30_v28  ;;  %s229_s2 = sshll.u32 %s346_s0, 4  ;;  %s230_s2 = int_to_ptr.vmem [resolvable:$true] %s229_s2 }
  0x14   :  { %275 = vmatprep.subr.bf16.mxu0 %v321_v11  ;;  %302 = vmatprep.subr.bf16.mxu1 %v321_v11  ;;  %s324_s7 = scalar_lea.vmem %s230_s2, 2048  ;;  %p329_p1 = scmp.lt.s32.totalorder %s230_s2, %s230_s2 }
  0x15   :  { %p325_p0 = scmp.ne.s32.totalorder %s230_s2, %s324_s7  ;;  %p330_p2 = scmp.lt.s32.totalorder %s324_s7, %s324_s7 }
  0x17   :  { %276 = vmatpush3.bf16.msra.mxu0 %v321_v11  ;;  %310 = vmatpush3.bf16.msra.mxu1 %v321_v11  ;;  %p331_p3 = por %p330_p2, %p329_p1 }
  0x18   :  { %277 = vmatprep.subr.bf16.mxu0 %v322_v12  ;;  %303 = vmatprep.subr.bf16.mxu1 %v322_v12 }
  0x19   :  { %p332_p4 = pnand %p331_p3, %p325_p0 }
  0x1b   :  { %278 = vmatpush3.bf16.msra.mxu0 %v322_v12  ;;  %311 = vmatpush3.bf16.msra.mxu1 %v322_v12 }
  0x1c   :  { %279 = vmatprep.subr.bf16.mxu0 %v323_v13  ;;  %304 = vmatprep.subr.bf16.mxu1 %v323_v13 }
  0x1f   :  { %280 = vmatpush3.bf16.msra.mxu0 %v323_v13  ;;  %312 = vmatpush3.bf16.msra.mxu1 %v323_v13 }
  0x22   :  { %282 = vmatmul.mubr.bf16.vlgmr.msra.gmra.mxu0 %v33_v22  ;;  %290 = vmatmul.mubr.bf16.vlgmr.msra.gmra.mxu1 %v37_v23 }
  0x23   :  { %285 = vmatprep.mubr.bf16.mxu0 %v34_v24  ;;  %293 = vmatprep.mubr.bf16.mxu1 %v38_v25 }
  0x2a   :  { %286 = vmatmul.mubr.bf16.gmra.mxu0 %v35_v30  ;;  %294 = vmatmul.mubr.bf16.gmra.mxu1 %v39_v31 }
  0xe2   :  { %v283_v33 = vpop.f32.mrf.mxu0  ;;  %v291_v34 = vpop.f32.mrf.mxu1 }
  0xe3   :  { %v154_v35 = vadd.f32 %v283_v33, %v240_v32  ;;  %v186_v36 = vadd.f32 %v291_v34, %v240_v32 }
  0xe4   :  { %v145_v37 = vpop.f32.mrf.mxu0  ;;  %v177_v38 = vpop.f32.mrf.mxu1 }
  0xe5   :  { %210 = vst [vmem:[#allocation2 + $0x10] sm:$0xff] %v154_v35  ;;  %218 = vst [vmem:[#allocation2 + $0x50] sm:$0xff] %v186_v36  ;;  %v146_v39 = vadd.f32 %v240_v32, %v145_v37  ;;  %v178_v40 = vadd.f32 %v240_v32, %v177_v38 }
  0xe6   :  { %v284_v41 = vpop.f32.mrf.mxu0  ;;  %v292_v42 = vpop.f32.mrf.mxu1 }
  0xe7   :  { %208 = vst [vmem:[#allocation2] sm:$0xff] %v146_v39  ;;  %216 = vst [vmem:[#allocation2 + $0x40] sm:$0xff] %v178_v40  ;;  %v157_v43 = vadd.f32 %v284_v41, %v240_v32  ;;  %v189_v44 = vadd.f32 %v292_v42, %v240_v32 }
  0xe8   :  { %v148_v45 = vpop.f32.mrf.mxu0  ;;  %v180_v46 = vpop.f32.mrf.mxu1 }
  0xe9   :  { %211 = vst [vmem:[#allocation2 + $0x18] sm:$0xff] %v157_v43  ;;  %219 = vst [vmem:[#allocation2 + $0x58] sm:$0xff] %v189_v44  ;;  %v149_v47 = vadd.f32 %v240_v32, %v148_v45  ;;  %v181_v48 = vadd.f32 %v240_v32, %v180_v46 }
  0xea   :  { %v287_v49 = vpop.f32.mrf.mxu0  ;;  %v295_v50 = vpop.f32.mrf.mxu1 }
  0xeb   :  { %209 = vst [vmem:[#allocation2 + $0x8] sm:$0xff] %v149_v47  ;;  %217 = vst [vmem:[#allocation2 + $0x48] sm:$0xff] %v181_v48  ;;  %v170_v51 = vadd.f32 %v287_v49, %v240_v32  ;;  %v202_v52 = vadd.f32 %v295_v50, %v240_v32 }
  0xec   :  { %v161_v53 = vpop.f32.mrf.mxu0  ;;  %v193_v54 = vpop.f32.mrf.mxu1 }
  0xed   :  { %214 = vst [vmem:[#allocation2 + $0x30] sm:$0xff] %v170_v51  ;;  %222 = vst [vmem:[#allocation2 + $0x70] sm:$0xff] %v202_v52  ;;  %v162_v55 = vadd.f32 %v240_v32, %v161_v53  ;;  %v194_v56 = vadd.f32 %v240_v32, %v193_v54 }
  0xee   :  { %v288_v57 = vpop.f32.mrf.mxu0  ;;  %v296_v58 = vpop.f32.mrf.mxu1 }
  0xef   :  { %212 = vst [vmem:[#allocation2 + $0x20] sm:$0xff] %v162_v55  ;;  %220 = vst [vmem:[#allocation2 + $0x60] sm:$0xff] %v194_v56  ;;  %v173_v59 = vadd.f32 %v288_v57, %v240_v32  ;;  %v205_v60 = vadd.f32 %v296_v58, %v240_v32 }
  0xf0   :  { %v164_v61 = vpop.f32.mrf.mxu0  ;;  %v196_v62 = vpop.f32.mrf.mxu1 }
  0xf1   :  { %215 = vst [vmem:[#allocation2 + $0x38] sm:$0xff] %v173_v59  ;;  %223 = vst [vmem:[#allocation2 + $0x78] sm:$0xff] %v205_v60  ;;  %v165_v63 = vadd.f32 %v240_v32, %v164_v61  ;;  %v197_v0 = vadd.f32 %v240_v32, %v196_v62 }
  0xf3   :  { %213 = vst [vmem:[#allocation2 + $0x28] sm:$0xff] %v165_v63  ;;  %221 = vst [vmem:[#allocation2 + $0x68] sm:$0xff] %v197_v0 }
  0xf4   :  { %335 = shalt.err (!%p332_p4)
}
  0xf5   :  { %s347_s8 = smov 128   ;;  %s348_s9 = smov 8  }
  0xf6   :  { %235 = dma.vmem_to_hbm [thread:$0]  %s230_s2, 2048, %s450_s3, [#allocation3], %s347_s8, %s347_s8, %s348_s9  }
  0xf7   :  { %344 = dma.done.wait [#allocation3], 2048  }
  0xf8   :  { %345 = vsyncadd [#allocation3], 4294965248 }
  0xf9   :  { %239 = vsyncpa [#allocation3], 1 }

</bundles_post_ra>
